<compile_context>
chip_gen: v5e
topology: v5e:2x2
jax: 0.10.0
libtpu: 0.0.40
codegen_flags: <defaults>
</compile_context>

<pallas_src>
import jax
import jax.numpy as jnp
from jax.experimental import pallas as pl
from jax.experimental.pallas import tpu as pltpu


def _round_up(x, m):
    return (x + m - 1) // m * m


def _sigmoid(x):
    # sigmoid(x) == 0.5 * tanh(0.5*x) + 0.5  -> single EUP op (tanh) instead of
    # exp + reciprocal + add; exact, not an approximation.
    return 0.5 * jnp.tanh(0.5 * x) + 0.5


def _lstm_structure_kernel(
    sro_ref,                                   # (3, TB, H) bf16 stacked [s, r, o]
    wih_ref, bih_ref,                          # (H, 8H) bf16, (1, 8H) f32
    whh_f_ref, whh_b_ref,                      # (H, 4H) bf16 each
    wc_x_ref, wc_hf_ref, wc_hb_ref, bc_ref,    # compress   FC: 3x(H,H) bf16, (1,H) f32
    wr_x_ref, wr_hf_ref, wr_hb_ref, br_ref,    # compress_r FC: 3x(H,H) bf16, (1,H) f32
    out_s_ref, out_r_ref, out_o_ref,           # (TB, H)
):
    _, TB, H = sro_ref.shape
    f32 = jnp.float32
    bf16 = jnp.bfloat16

    x3 = sro_ref[...]                          # (3, TB, H) bf16
    xs = x3.reshape(3 * TB, H)                 # free sublane collapse (TB % 16 == 0)
    s, r, o = x3[0], x3[1], x3[2]              # (TB, H) each

    # ---- Fused input projections: one (3TB, H) @ (H, 8H) matmul, bias folded once.
    x_proj = jnp.dot(xs, wih_ref[...], preferred_element_type=f32) + bih_ref[...]

    def step(carry, xproj_t, whh):
        """One LSTM step; h/c are None at t=0 (zero initial state)."""
        h, c = carry
        gates = xproj_t
        if h is not None:
            gates = gates + jnp.dot(h.astype(bf16), whh, preferred_element_type=f32)
        i_g = _sigmoid(gates[:, 0 * H:1 * H])
        f_g = _sigmoid(gates[:, 1 * H:2 * H])
        g_g = jnp.tanh(gates[:, 2 * H:3 * H])
        o_g = _sigmoid(gates[:, 3 * H:4 * H])
        c_new = i_g * g_g if c is None else f_g * c + i_g * g_g
        h_new = o_g * jnp.tanh(c_new)
        return h_new, c_new

    # Forward direction: s, r, o   (x_proj rows t*TB, columns [:4H]).
    carry_f = (None, None)
    for t in (0, 1, 2):
        carry_f = step(carry_f, x_proj[t * TB:(t + 1) * TB, 0:4 * H], whh_f_ref[...])
    # Backward direction: o, r, s  (x_proj rows t*TB, columns [4H:]).
    carry_b = (None, None)
    for t in (2, 1, 0):
        carry_b = step(carry_b, x_proj[t * TB:(t + 1) * TB, 4 * H:8 * H], whh_b_ref[...])

    h_f = carry_f[0].astype(bf16)
    h_b = carry_b[0].astype(bf16)

    # ---- FCs with pre-split weights (no lane-axis concats).
    # Shared hn-partial of `compress` (used by both out_s and out_o), computed once.
    hn_c = (jnp.dot(h_f, wc_hf_ref[...], preferred_element_type=f32)
            + jnp.dot(h_b, wc_hb_ref[...], preferred_element_type=f32)
            + bc_ref[...])
    hn_r = (jnp.dot(h_f, wr_hf_ref[...], preferred_element_type=f32)
            + jnp.dot(h_b, wr_hb_ref[...], preferred_element_type=f32)
            + br_ref[...])

    s_x = jnp.dot(s, wc_x_ref[...], preferred_element_type=f32)
    o_x = jnp.dot(o, wc_x_ref[...], preferred_element_type=f32)
    r_x = jnp.dot(r, wr_x_ref[...], preferred_element_type=f32)

    out_s_ref[...] = jnp.maximum(s_x + hn_c, 0.0).astype(out_s_ref.dtype)
    out_o_ref[...] = jnp.maximum(o_x + hn_c, 0.0).astype(out_o_ref.dtype)
    out_r_ref[...] = jnp.maximum(r_x + hn_r, 0.0).astype(out_r_ref.dtype)


def _vmem_capacity_bytes():
    """Best-effort physical VMEM query; fall back to the 128-MiB (v5e/v6e) value."""
    try:
        info = pltpu.get_tpu_info()
        for name in ("vmem_capacity_bytes", "vmem_size_bytes", "vmem_bytes"):
            cap = getattr(info, name, None)
            if cap:
                return int(cap)
    except Exception:
        pass
    return 128 * 1024 * 1024


def lstm_structure_pallas(s, r, o, params, *, batch_tile=None, out_dtype=jnp.float32):
    """s, r, o: (B, H) float32. Returns (out_s, out_r, out_o), each (B, H) out_dtype."""
    B, H = s.shape
    vmem_cap = _vmem_capacity_bytes()

    if batch_tile is None:
        # Generation-aware batch tile: 512 on 128-MiB parts (v5e/v6e), 256 on 64-MiB v7x.
        tb_target = 512 if vmem_cap >= 100 * 1024 * 1024 else 256
        TB = min(tb_target, _round_up(B, 16))
        # Guarantee >= 2 grid steps so ("parallel",) can shard across both v7x
        # TensorCores; negligible extra grid-step cost on single-TC v5e/v6e.
        if B > 16 and _round_up(B, TB) // TB < 2:
            TB = _round_up((B + 1) // 2, 16)
    else:
        TB = _round_up(batch_tile, 16)
    B_pad = _round_up(B, TB)

    # Stack s/r/o into one (3, B_pad, H) bf16 array: one DMA stream per grid step
    # and no in-kernel sublane concat.
    xs = jnp.stack([s, r, o], axis=0)
    if B_pad != B:
        xs = jnp.pad(xs, ((0, 0), (0, B_pad - B), (0, 0)))
    xs = xs.astype(jnp.bfloat16)

    weights = (
        params["wih"], params["bih"],
        params["whh_f"], params["whh_b"],
        params["wc_x"], params["wc_hf"], params["wc_hb"], params["bc"],
        params["wr_x"], params["wr_hf"], params["wr_hb"], params["br"],
    )
    out_itemsize = jnp.dtype(out_dtype).itemsize

    def build_and_run(single_buffer_weights):
        act_spec = pl.BlockSpec((3, TB, H), lambda i: (0, i, 0))
        if single_buffer_weights:
            # Constant index map -> fetched once; Buffered(1) drops the second (dead)
            # pipeline buffer, halving weight VMEM (critical on 64-MiB v7x).
            w_specs = [pl.BlockSpec(w.shape, lambda i: (0, 0),
                                    pipeline_mode=pl.Buffered(1)) for w in weights]
            wmult = 1
        else:
            w_specs = [pl.BlockSpec(w.shape, lambda i: (0, 0)) for w in weights]
            wmult = 2
        out_spec = pl.BlockSpec((TB, H), lambda i: (i, 0))

        # Budget-derived VMEM limit instead of a flat constant.
        weight_bytes = sum(int(w.size) * w.dtype.itemsize for w in weights)
        io_bytes = 2 * 3 * TB * H * 2 + 2 * 3 * TB * H * out_itemsize  # acts + outs, dbl-buf
        scratch_bytes = 3 * TB * 8 * H * 4 + 12 * TB * H * 4           # x_proj + gate/state temps
        budget = int(1.5 * (wmult * weight_bytes + io_bytes + scratch_bytes)) + (4 << 20)
        vmem_limit = max(32 << 20, min(budget, int(0.75 * vmem_cap)))

        grid_spec = pltpu.PrefetchScalarGridSpec(
            num_scalar_prefetch=0,
            grid=(B_pad // TB,),
            in_specs=[act_spec] + w_specs,
            out_specs=(out_spec, out_spec, out_spec),
        )
        fn = pl.pallas_call(
            _lstm_structure_kernel,
            out_shape=tuple(jax.ShapeDtypeStruct((B_pad, H), out_dtype) for _ in range(3)),
            grid_spec=grid_spec,
            compiler_params=pltpu.CompilerParams(
                dimension_semantics=("parallel",),
                vmem_limit_bytes=vmem_limit,
            ),
        )
        return fn(xs, *weights)

    # TODO(synk): for small-batch repeated inference, the one-time weight DMA dominates;
    # a cross-pallas_call weight prefetch (pattern P10) would hide it.
    try:
        out_s, out_r, out_o = build_and_run(single_buffer_weights=True)
    except Exception:
        # pl.Buffered(1) not supported by this JAX/Mosaic build -> fall back to the
        # default double-buffered weight pipeline (identical results).
        out_s, out_r, out_o = build_and_run(single_buffer_weights=False)

    if B_pad != B:
        out_s, out_r, out_o = out_s[:B], out_r[:B], out_o[:B]
    return out_s, out_r, out_o


def make_params(key, nhidden):
    """Deterministic synthetic parameters with PyTorch-equivalent shapes, stored in
    the kernel layout: pre-transposed, direction-concatenated input weights,
    per-block-split FC weights; bf16 matmul weights, f32 biases."""
    H = nhidden
    ks = jax.random.split(key, 12)
    scale = 0.1
    f32, bf16 = jnp.float32, jnp.bfloat16

    def rnd(k, shape):
        return scale * jax.random.normal(k, shape, dtype=f32)

    # nn.LSTM(H, H, 1, bidirectional=True): gate order (i, f, g, o).
    w_ih_f = rnd(ks[0], (4 * H, H)); w_hh_f = rnd(ks[1], (4 * H, H))
    b_ih_f = rnd(ks[2], (4 * H,));   b_hh_f = rnd(ks[3], (4 * H,))
    w_ih_b = rnd(ks[4], (4 * H, H)); w_hh_b = rnd(ks[5], (4 * H, H))
    b_ih_b = rnd(ks[6], (4 * H,));   b_hh_b = rnd(ks[7], (4 * H,))

    # FC(3H -> H) x2 (nn.Linear weight shape (H, 3H)); input layout [x | h_fwd | h_bwd].
    w_c = rnd(ks[8], (H, 3 * H));  b_c = rnd(ks[9], (H,))
    w_r = rnd(ks[10], (H, 3 * H)); b_r = rnd(ks[11], (H,))

    wc_t = w_c.T   # (3H, H)
    wr_t = w_r.T

    return dict(
        # (H, 8H): columns [forward i,f,g,o | backward i,f,g,o]
        wih=jnp.concatenate([w_ih_f.T, w_ih_b.T], axis=1).astype(bf16),
        bih=jnp.concatenate([b_ih_f + b_hh_f, b_ih_b + b_hh_b])[None, :].astype(f32),
        whh_f=w_hh_f.T.astype(bf16),
        whh_b=w_hh_b.T.astype(bf16),
        wc_x=wc_t[0 * H:1 * H].astype(bf16),
        wc_hf=wc_t[1 * H:2 * H].astype(bf16),
        wc_hb=wc_t[2 * H:3 * H].astype(bf16),
        bc=b_c[None, :].astype(f32),
        wr_x=wr_t[0 * H:1 * H].astype(bf16),
        wr_hf=wr_t[1 * H:2 * H].astype(bf16),
        wr_hb=wr_t[2 * H:3 * H].astype(bf16),
        br=b_r[None, :].astype(f32),
    )


def reference_forward(s, r, o, p):
    """Pure-JAX f32 reference of the PyTorch forward (eval mode), using the same
    (bf16-stored) weight values as the kernel."""
    H = s.shape[1]
    f32 = jnp.float32

    wih = p["wih"].astype(f32)
    bih = p["bih"].astype(f32)
    wih_f, wih_b = wih[:, :4 * H], wih[:, 4 * H:]
    b_f, b_b = bih[:, :4 * H], bih[:, 4 * H:]
    whh_f = p["whh_f"].astype(f32)
    whh_b = p["whh_b"].astype(f32)

    def run_lstm(seq, wih_, whh_, b_):
        h = jnp.zeros((seq[0].shape[0], H), f32)
        c = jnp.zeros_like(h)
        for x_t in seq:
            g = x_t @ wih_ + h @ whh_ + b_
            i_g = jax.nn.sigmoid(g[:, :H])
            f_g = jax.nn.sigmoid(g[:, H:2 * H])
            g_g = jnp.tanh(g[:, 2 * H:3 * H])
            o_g = jax.nn.sigmoid(g[:, 3 * H:])
            c = f_g * c + i_g * g_g
            h = o_g * jnp.tanh(c)
        return h

    h_f = run_lstm([s, r, o], wih_f, whh_f, b_f)
    h_b = run_lstm([o, r, s], wih_b, whh_b, b_b)
    hn = jnp.concatenate([h_f, h_b], axis=1)

    wc = jnp.concatenate([p["wc_x"], p["wc_hf"], p["wc_hb"]], axis=0).astype(f32)
    wr = jnp.concatenate([p["wr_x"], p["wr_hf"], p["wr_hb"]], axis=0).astype(f32)
    bc = p["bc"].astype(f32)
    br = p["br"].astype(f32)

    out_s = jnp.maximum(jnp.concatenate([s, hn], 1) @ wc + bc, 0.0)
    out_r = jnp.maximum(jnp.concatenate([r, hn], 1) @ wr + br, 0.0)
    out_o = jnp.maximum(jnp.concatenate([o, hn], 1) @ wc + bc, 0.0)
    return out_s, out_r, out_o


if __name__ == "__main__":
    B, H = 8, 32   # small test shapes; the original module uses nhidden=512
    key = jax.random.PRNGKey(0)
    k_s, k_r, k_o, k_p = jax.random.split(key, 4)

    s = jax.random.normal(k_s, (B, H), dtype=jnp.float32)
    r = jax.random.normal(k_r, (B, H), dtype=jnp.float32)
    o = jax.random.normal(k_o, (B, H), dtype=jnp.float32)
    params = make_params(k_p, H)

    out_s, out_r, out_o = lstm_structure_pallas(s, r, o, params)
    jax.block_until_ready((out_s, out_r, out_o))

    ref_s, ref_r, ref_o = reference_forward(s, r, o, params)

    # bf16 matmul operands are a deliberate precision trade vs the f32 reference.
    tol = dict(atol=3e-2, rtol=3e-2)
    assert jnp.allclose(out_s, ref_s, **tol), float(jnp.max(jnp.abs(out_s - ref_s)))
    assert jnp.allclose(out_r, ref_r, **tol), float(jnp.max(jnp.abs(out_r - ref_r)))
    assert jnp.allclose(out_o, ref_o, **tol), float(jnp.max(jnp.abs(out_o - ref_o)))

    print("KERNEL_OK")
</pallas_src>

<mosaic_0001>
module attributes {stable_mosaic.version = 11 : i64} {
  func.func @_lstm_structure_kernel(%arg0: i32, %arg1: memref<3x16x32xbf16, #tpu.memory_space<vmem>>, %arg2: memref<32x256xbf16, #tpu.memory_space<vmem>>, %arg3: memref<1x256xf32, #tpu.memory_space<vmem>>, %arg4: memref<32x128xbf16, #tpu.memory_space<vmem>>, %arg5: memref<32x128xbf16, #tpu.memory_space<vmem>>, %arg6: memref<32x32xbf16, #tpu.memory_space<vmem>>, %arg7: memref<32x32xbf16, #tpu.memory_space<vmem>>, %arg8: memref<32x32xbf16, #tpu.memory_space<vmem>>, %arg9: memref<1x32xf32, #tpu.memory_space<vmem>>, %arg10: memref<32x32xbf16, #tpu.memory_space<vmem>>, %arg11: memref<32x32xbf16, #tpu.memory_space<vmem>>, %arg12: memref<32x32xbf16, #tpu.memory_space<vmem>>, %arg13: memref<1x32xf32, #tpu.memory_space<vmem>>, %arg14: memref<16x32xf32, #tpu.memory_space<vmem>>, %arg15: memref<16x32xf32, #tpu.memory_space<vmem>>, %arg16: memref<16x32xf32, #tpu.memory_space<vmem>>) attributes {dimension_semantics = [#tpu.dimension_semantics<parallel>], iteration_bounds = array<i64: 1>, scalar_prefetch = 0 : i64, scratch_operands = 0 : i64, tpu.core_type = #tpu.core_type<tc>, window_params = [{transform_indices = @transform_0, window_bounds = array<i64: 3, 16, 32>}, {pipeline_mode = #tpu.pipeline_mode<synchronous>, transform_indices = @transform_1, window_bounds = array<i64: 32, 256>}, {pipeline_mode = #tpu.pipeline_mode<synchronous>, transform_indices = @transform_2, window_bounds = array<i64: 1, 256>}, {pipeline_mode = #tpu.pipeline_mode<synchronous>, transform_indices = @transform_3, window_bounds = array<i64: 32, 128>}, {pipeline_mode = #tpu.pipeline_mode<synchronous>, transform_indices = @transform_4, window_bounds = array<i64: 32, 128>}, {pipeline_mode = #tpu.pipeline_mode<synchronous>, transform_indices = @transform_5, window_bounds = array<i64: 32, 32>}, {pipeline_mode = #tpu.pipeline_mode<synchronous>, transform_indices = @transform_6, window_bounds = array<i64: 32, 32>}, {pipeline_mode = #tpu.pipeline_mode<synchronous>, transform_indices = @transform_7, window_bounds = array<i64: 32, 32>}, {pipeline_mode = #tpu.pipeline_mode<synchronous>, transform_indices = @transform_8, window_bounds = array<i64: 1, 32>}, {pipeline_mode = #tpu.pipeline_mode<synchronous>, transform_indices = @transform_9, window_bounds = array<i64: 32, 32>}, {pipeline_mode = #tpu.pipeline_mode<synchronous>, transform_indices = @transform_10, window_bounds = array<i64: 32, 32>}, {pipeline_mode = #tpu.pipeline_mode<synchronous>, transform_indices = @transform_11, window_bounds = array<i64: 32, 32>}, {pipeline_mode = #tpu.pipeline_mode<synchronous>, transform_indices = @transform_12, window_bounds = array<i64: 1, 32>}, {transform_indices = @transform_13, window_bounds = array<i64: 16, 32>}, {transform_indices = @transform_14, window_bounds = array<i64: 16, 32>}, {transform_indices = @transform_15, window_bounds = array<i64: 16, 32>}]} {
    %c0 = arith.constant 0 : index
    %c0_0 = arith.constant 0 : index
    %c0_1 = arith.constant 0 : index
    %0 = vector.load %arg1[%c0, %c0_0, %c0_1] : memref<3x16x32xbf16, #tpu.memory_space<vmem>>, vector<3x16x32xbf16>
    %1 = vector.shape_cast %0 : vector<3x16x32xbf16> to vector<48x32xbf16>
    %2 = vector.extract_strided_slice %0 {offsets = [0, 0, 0], sizes = [1, 16, 32], strides = [1, 1, 1]} : vector<3x16x32xbf16> to vector<1x16x32xbf16>
    %3 = vector.shape_cast %2 : vector<1x16x32xbf16> to vector<16x32xbf16>
    %4 = vector.extract_strided_slice %0 {offsets = [1, 0, 0], sizes = [1, 16, 32], strides = [1, 1, 1]} : vector<3x16x32xbf16> to vector<1x16x32xbf16>
    %5 = vector.shape_cast %4 : vector<1x16x32xbf16> to vector<16x32xbf16>
    %6 = vector.extract_strided_slice %0 {offsets = [2, 0, 0], sizes = [1, 16, 32], strides = [1, 1, 1]} : vector<3x16x32xbf16> to vector<1x16x32xbf16>
    %7 = vector.shape_cast %6 : vector<1x16x32xbf16> to vector<16x32xbf16>
    %c0_2 = arith.constant 0 : index
    %c0_3 = arith.constant 0 : index
    %8 = vector.load %arg2[%c0_2, %c0_3] : memref<32x256xbf16, #tpu.memory_space<vmem>>, vector<32x256xbf16>
    %cst = arith.constant dense<0.000000e+00> : vector<48x256xf32>
    %9 = tpu.matmul %1, %8, %cst {dimension_numbers = #tpu.dot_dimension_numbers<[1], [0], [0], [1], [0, 0, 1, 1], [], []>} : vector<48x32xbf16>, vector<32x256xbf16>, vector<48x256xf32> -> vector<48x256xf32>
    %c0_4 = arith.constant 0 : index
    %c0_5 = arith.constant 0 : index
    %10 = vector.load %arg3[%c0_4, %c0_5] : memref<1x256xf32, #tpu.memory_space<vmem>>, vector<1x256xf32>
    %11 = vector.broadcast %10 : vector<1x256xf32> to vector<48x256xf32>
    %12 = arith.addf %9, %11 : vector<48x256xf32>
    %13 = vector.extract_strided_slice %12 {offsets = [0, 0], sizes = [16, 128], strides = [1, 1]} : vector<48x256xf32> to vector<16x128xf32>
    %14 = vector.extract_strided_slice %13 {offsets = [0, 0], sizes = [16, 32], strides = [1, 1]} : vector<16x128xf32> to vector<16x32xf32>
    %cst_6 = arith.constant 5.000000e-01 : f32
    %15 = vector.broadcast %cst_6 : f32 to vector<16x32xf32>
    %16 = arith.mulf %15, %14 : vector<16x32xf32>
    %17 = math.tanh %16 : vector<16x32xf32>
    %cst_7 = arith.constant 5.000000e-01 : f32
    %18 = vector.broadcast %cst_7 : f32 to vector<16x32xf32>
    %19 = arith.mulf %18, %17 : vector<16x32xf32>
    %cst_8 = arith.constant 5.000000e-01 : f32
    %20 = vector.broadcast %cst_8 : f32 to vector<16x32xf32>
    %21 = arith.addf %19, %20 : vector<16x32xf32>
    %22 = vector.extract_strided_slice %13 {offsets = [0, 64], sizes = [16, 32], strides = [1, 1]} : vector<16x128xf32> to vector<16x32xf32>
    %23 = math.tanh %22 : vector<16x32xf32>
    %24 = vector.extract_strided_slice %13 {offsets = [0, 96], sizes = [16, 32], strides = [1, 1]} : vector<16x128xf32> to vector<16x32xf32>
    %cst_9 = arith.constant 5.000000e-01 : f32
    %25 = vector.broadcast %cst_9 : f32 to vector<16x32xf32>
    %26 = arith.mulf %25, %24 : vector<16x32xf32>
    %27 = math.tanh %26 : vector<16x32xf32>
    %cst_10 = arith.constant 5.000000e-01 : f32
    %28 = vector.broadcast %cst_10 : f32 to vector<16x32xf32>
    %29 = arith.mulf %28, %27 : vector<16x32xf32>
    %cst_11 = arith.constant 5.000000e-01 : f32
    %30 = vector.broadcast %cst_11 : f32 to vector<16x32xf32>
    %31 = arith.addf %29, %30 : vector<16x32xf32>
    %32 = arith.mulf %21, %23 : vector<16x32xf32>
    %33 = math.tanh %32 : vector<16x32xf32>
    %34 = arith.mulf %31, %33 : vector<16x32xf32>
    %35 = vector.extract_strided_slice %12 {offsets = [16, 0], sizes = [16, 128], strides = [1, 1]} : vector<48x256xf32> to vector<16x128xf32>
    %c0_12 = arith.constant 0 : index
    %c0_13 = arith.constant 0 : index
    %36 = vector.load %arg4[%c0_12, %c0_13] : memref<32x128xbf16, #tpu.memory_space<vmem>>, vector<32x128xbf16>
    %37 = arith.truncf %34 : vector<16x32xf32> to vector<16x32xbf16>
    %cst_14 = arith.constant dense<0.000000e+00> : vector<16x128xf32>
    %38 = tpu.matmul %37, %36, %cst_14 {dimension_numbers = #tpu.dot_dimension_numbers<[1], [0], [0], [1], [0, 0, 1, 1], [], []>} : vector<16x32xbf16>, vector<32x128xbf16>, vector<16x128xf32> -> vector<16x128xf32>
    %39 = arith.addf %35, %38 : vector<16x128xf32>
    %40 = vector.extract_strided_slice %39 {offsets = [0, 0], sizes = [16, 32], strides = [1, 1]} : vector<16x128xf32> to vector<16x32xf32>
    %cst_15 = arith.constant 5.000000e-01 : f32
    %41 = vector.broadcast %cst_15 : f32 to vector<16x32xf32>
    %42 = arith.mulf %41, %40 : vector<16x32xf32>
    %43 = math.tanh %42 : vector<16x32xf32>
    %cst_16 = arith.constant 5.000000e-01 : f32
    %44 = vector.broadcast %cst_16 : f32 to vector<16x32xf32>
    %45 = arith.mulf %44, %43 : vector<16x32xf32>
    %cst_17 = arith.constant 5.000000e-01 : f32
    %46 = vector.broadcast %cst_17 : f32 to vector<16x32xf32>
    %47 = arith.addf %45, %46 : vector<16x32xf32>
    %48 = vector.extract_strided_slice %39 {offsets = [0, 32], sizes = [16, 32], strides = [1, 1]} : vector<16x128xf32> to vector<16x32xf32>
    %cst_18 = arith.constant 5.000000e-01 : f32
    %49 = vector.broadcast %cst_18 : f32 to vector<16x32xf32>
    %50 = arith.mulf %49, %48 : vector<16x32xf32>
    %51 = math.tanh %50 : vector<16x32xf32>
    %cst_19 = arith.constant 5.000000e-01 : f32
    %52 = vector.broadcast %cst_19 : f32 to vector<16x32xf32>
    %53 = arith.mulf %52, %51 : vector<16x32xf32>
    %cst_20 = arith.constant 5.000000e-01 : f32
    %54 = vector.broadcast %cst_20 : f32 to vector<16x32xf32>
    %55 = arith.addf %53, %54 : vector<16x32xf32>
    %56 = vector.extract_strided_slice %39 {offsets = [0, 64], sizes = [16, 32], strides = [1, 1]} : vector<16x128xf32> to vector<16x32xf32>
    %57 = math.tanh %56 : vector<16x32xf32>
    %58 = vector.extract_strided_slice %39 {offsets = [0, 96], sizes = [16, 32], strides = [1, 1]} : vector<16x128xf32> to vector<16x32xf32>
    %cst_21 = arith.constant 5.000000e-01 : f32
    %59 = vector.broadcast %cst_21 : f32 to vector<16x32xf32>
    %60 = arith.mulf %59, %58 : vector<16x32xf32>
    %61 = math.tanh %60 : vector<16x32xf32>
    %cst_22 = arith.constant 5.000000e-01 : f32
    %62 = vector.broadcast %cst_22 : f32 to vector<16x32xf32>
    %63 = arith.mulf %62, %61 : vector<16x32xf32>
    %cst_23 = arith.constant 5.000000e-01 : f32
    %64 = vector.broadcast %cst_23 : f32 to vector<16x32xf32>
    %65 = arith.addf %63, %64 : vector<16x32xf32>
    %66 = arith.mulf %55, %32 : vector<16x32xf32>
    %67 = arith.mulf %47, %57 : vector<16x32xf32>
    %68 = arith.addf %66, %67 : vector<16x32xf32>
    %69 = math.tanh %68 : vector<16x32xf32>
    %70 = arith.mulf %65, %69 : vector<16x32xf32>
    %71 = vector.extract_strided_slice %12 {offsets = [32, 0], sizes = [16, 128], strides = [1, 1]} : vector<48x256xf32> to vector<16x128xf32>
    %c0_24 = arith.constant 0 : index
    %c0_25 = arith.constant 0 : index
    %72 = vector.load %arg4[%c0_24, %c0_25] : memref<32x128xbf16, #tpu.memory_space<vmem>>, vector<32x128xbf16>
    %73 = arith.truncf %70 : vector<16x32xf32> to vector<16x32xbf16>
    %cst_26 = arith.constant dense<0.000000e+00> : vector<16x128xf32>
    %74 = tpu.matmul %73, %72, %cst_26 {dimension_numbers = #tpu.dot_dimension_numbers<[1], [0], [0], [1], [0, 0, 1, 1], [], []>} : vector<16x32xbf16>, vector<32x128xbf16>, vector<16x128xf32> -> vector<16x128xf32>
    %75 = arith.addf %71, %74 : vector<16x128xf32>
    %76 = vector.extract_strided_slice %75 {offsets = [0, 0], sizes = [16, 32], strides = [1, 1]} : vector<16x128xf32> to vector<16x32xf32>
    %cst_27 = arith.constant 5.000000e-01 : f32
    %77 = vector.broadcast %cst_27 : f32 to vector<16x32xf32>
    %78 = arith.mulf %77, %76 : vector<16x32xf32>
    %79 = math.tanh %78 : vector<16x32xf32>
    %cst_28 = arith.constant 5.000000e-01 : f32
    %80 = vector.broadcast %cst_28 : f32 to vector<16x32xf32>
    %81 = arith.mulf %80, %79 : vector<16x32xf32>
    %cst_29 = arith.constant 5.000000e-01 : f32
    %82 = vector.broadcast %cst_29 : f32 to vector<16x32xf32>
    %83 = arith.addf %81, %82 : vector<16x32xf32>
    %84 = vector.extract_strided_slice %75 {offsets = [0, 32], sizes = [16, 32], strides = [1, 1]} : vector<16x128xf32> to vector<16x32xf32>
    %cst_30 = arith.constant 5.000000e-01 : f32
    %85 = vector.broadcast %cst_30 : f32 to vector<16x32xf32>
    %86 = arith.mulf %85, %84 : vector<16x32xf32>
    %87 = math.tanh %86 : vector<16x32xf32>
    %cst_31 = arith.constant 5.000000e-01 : f32
    %88 = vector.broadcast %cst_31 : f32 to vector<16x32xf32>
    %89 = arith.mulf %88, %87 : vector<16x32xf32>
    %cst_32 = arith.constant 5.000000e-01 : f32
    %90 = vector.broadcast %cst_32 : f32 to vector<16x32xf32>
    %91 = arith.addf %89, %90 : vector<16x32xf32>
    %92 = vector.extract_strided_slice %75 {offsets = [0, 64], sizes = [16, 32], strides = [1, 1]} : vector<16x128xf32> to vector<16x32xf32>
    %93 = math.tanh %92 : vector<16x32xf32>
    %94 = vector.extract_strided_slice %75 {offsets = [0, 96], sizes = [16, 32], strides = [1, 1]} : vector<16x128xf32> to vector<16x32xf32>
    %cst_33 = arith.constant 5.000000e-01 : f32
    %95 = vector.broadcast %cst_33 : f32 to vector<16x32xf32>
    %96 = arith.mulf %95, %94 : vector<16x32xf32>
    %97 = math.tanh %96 : vector<16x32xf32>
    %cst_34 = arith.constant 5.000000e-01 : f32
    %98 = vector.broadcast %cst_34 : f32 to vector<16x32xf32>
    %99 = arith.mulf %98, %97 : vector<16x32xf32>
    %cst_35 = arith.constant 5.000000e-01 : f32
    %100 = vector.broadcast %cst_35 : f32 to vector<16x32xf32>
    %101 = arith.addf %99, %100 : vector<16x32xf32>
    %102 = arith.mulf %91, %68 : vector<16x32xf32>
    %103 = arith.mulf %83, %93 : vector<16x32xf32>
    %104 = arith.addf %102, %103 : vector<16x32xf32>
    %105 = math.tanh %104 : vector<16x32xf32>
    %106 = arith.mulf %101, %105 : vector<16x32xf32>
    %107 = vector.extract_strided_slice %12 {offsets = [32, 128], sizes = [16, 128], strides = [1, 1]} : vector<48x256xf32> to vector<16x128xf32>
    %108 = vector.extract_strided_slice %107 {offsets = [0, 0], sizes = [16, 32], strides = [1, 1]} : vector<16x128xf32> to vector<16x32xf32>
    %cst_36 = arith.constant 5.000000e-01 : f32
    %109 = vector.broadcast %cst_36 : f32 to vector<16x32xf32>
    %110 = arith.mulf %109, %108 : vector<16x32xf32>
    %111 = math.tanh %110 : vector<16x32xf32>
    %cst_37 = arith.constant 5.000000e-01 : f32
    %112 = vector.broadcast %cst_37 : f32 to vector<16x32xf32>
    %113 = arith.mulf %112, %111 : vector<16x32xf32>
    %cst_38 = arith.constant 5.000000e-01 : f32
    %114 = vector.broadcast %cst_38 : f32 to vector<16x32xf32>
    %115 = arith.addf %113, %114 : vector<16x32xf32>
    %116 = vector.extract_strided_slice %107 {offsets = [0, 64], sizes = [16, 32], strides = [1, 1]} : vector<16x128xf32> to vector<16x32xf32>
    %117 = math.tanh %116 : vector<16x32xf32>
    %118 = vector.extract_strided_slice %107 {offsets = [0, 96], sizes = [16, 32], strides = [1, 1]} : vector<16x128xf32> to vector<16x32xf32>
    %cst_39 = arith.constant 5.000000e-01 : f32
    %119 = vector.broadcast %cst_39 : f32 to vector<16x32xf32>
    %120 = arith.mulf %119, %118 : vector<16x32xf32>
    %121 = math.tanh %120 : vector<16x32xf32>
    %cst_40 = arith.constant 5.000000e-01 : f32
    %122 = vector.broadcast %cst_40 : f32 to vector<16x32xf32>
    %123 = arith.mulf %122, %121 : vector<16x32xf32>
    %cst_41 = arith.constant 5.000000e-01 : f32
    %124 = vector.broadcast %cst_41 : f32 to vector<16x32xf32>
    %125 = arith.addf %123, %124 : vector<16x32xf32>
    %126 = arith.mulf %115, %117 : vector<16x32xf32>
    %127 = math.tanh %126 : vector<16x32xf32>
    %128 = arith.mulf %125, %127 : vector<16x32xf32>
    %129 = vector.extract_strided_slice %12 {offsets = [16, 128], sizes = [16, 128], strides = [1, 1]} : vector<48x256xf32> to vector<16x128xf32>
    %c0_42 = arith.constant 0 : index
    %c0_43 = arith.constant 0 : index
    %130 = vector.load %arg5[%c0_42, %c0_43] : memref<32x128xbf16, #tpu.memory_space<vmem>>, vector<32x128xbf16>
    %131 = arith.truncf %128 : vector<16x32xf32> to vector<16x32xbf16>
    %cst_44 = arith.constant dense<0.000000e+00> : vector<16x128xf32>
    %132 = tpu.matmul %131, %130, %cst_44 {dimension_numbers = #tpu.dot_dimension_numbers<[1], [0], [0], [1], [0, 0, 1, 1], [], []>} : vector<16x32xbf16>, vector<32x128xbf16>, vector<16x128xf32> -> vector<16x128xf32>
    %133 = arith.addf %129, %132 : vector<16x128xf32>
    %134 = vector.extract_strided_slice %133 {offsets = [0, 0], sizes = [16, 32], strides = [1, 1]} : vector<16x128xf32> to vector<16x32xf32>
    %cst_45 = arith.constant 5.000000e-01 : f32
    %135 = vector.broadcast %cst_45 : f32 to vector<16x32xf32>
    %136 = arith.mulf %135, %134 : vector<16x32xf32>
    %137 = math.tanh %136 : vector<16x32xf32>
    %cst_46 = arith.constant 5.000000e-01 : f32
    %138 = vector.broadcast %cst_46 : f32 to vector<16x32xf32>
    %139 = arith.mulf %138, %137 : vector<16x32xf32>
    %cst_47 = arith.constant 5.000000e-01 : f32
    %140 = vector.broadcast %cst_47 : f32 to vector<16x32xf32>
    %141 = arith.addf %139, %140 : vector<16x32xf32>
    %142 = vector.extract_strided_slice %133 {offsets = [0, 32], sizes = [16, 32], strides = [1, 1]} : vector<16x128xf32> to vector<16x32xf32>
    %cst_48 = arith.constant 5.000000e-01 : f32
    %143 = vector.broadcast %cst_48 : f32 to vector<16x32xf32>
    %144 = arith.mulf %143, %142 : vector<16x32xf32>
    %145 = math.tanh %144 : vector<16x32xf32>
    %cst_49 = arith.constant 5.000000e-01 : f32
    %146 = vector.broadcast %cst_49 : f32 to vector<16x32xf32>
    %147 = arith.mulf %146, %145 : vector<16x32xf32>
    %cst_50 = arith.constant 5.000000e-01 : f32
    %148 = vector.broadcast %cst_50 : f32 to vector<16x32xf32>
    %149 = arith.addf %147, %148 : vector<16x32xf32>
    %150 = vector.extract_strided_slice %133 {offsets = [0, 64], sizes = [16, 32], strides = [1, 1]} : vector<16x128xf32> to vector<16x32xf32>
    %151 = math.tanh %150 : vector<16x32xf32>
    %152 = vector.extract_strided_slice %133 {offsets = [0, 96], sizes = [16, 32], strides = [1, 1]} : vector<16x128xf32> to vector<16x32xf32>
    %cst_51 = arith.constant 5.000000e-01 : f32
    %153 = vector.broadcast %cst_51 : f32 to vector<16x32xf32>
    %154 = arith.mulf %153, %152 : vector<16x32xf32>
    %155 = math.tanh %154 : vector<16x32xf32>
    %cst_52 = arith.constant 5.000000e-01 : f32
    %156 = vector.broadcast %cst_52 : f32 to vector<16x32xf32>
    %157 = arith.mulf %156, %155 : vector<16x32xf32>
    %cst_53 = arith.constant 5.000000e-01 : f32
    %158 = vector.broadcast %cst_53 : f32 to vector<16x32xf32>
    %159 = arith.addf %157, %158 : vector<16x32xf32>
    %160 = arith.mulf %149, %126 : vector<16x32xf32>
    %161 = arith.mulf %141, %151 : vector<16x32xf32>
    %162 = arith.addf %160, %161 : vector<16x32xf32>
    %163 = math.tanh %162 : vector<16x32xf32>
    %164 = arith.mulf %159, %163 : vector<16x32xf32>
    %165 = vector.extract_strided_slice %12 {offsets = [0, 128], sizes = [16, 128], strides = [1, 1]} : vector<48x256xf32> to vector<16x128xf32>
    %c0_54 = arith.constant 0 : index
    %c0_55 = arith.constant 0 : index
    %166 = vector.load %arg5[%c0_54, %c0_55] : memref<32x128xbf16, #tpu.memory_space<vmem>>, vector<32x128xbf16>
    %167 = arith.truncf %164 : vector<16x32xf32> to vector<16x32xbf16>
    %cst_56 = arith.constant dense<0.000000e+00> : vector<16x128xf32>
    %168 = tpu.matmul %167, %166, %cst_56 {dimension_numbers = #tpu.dot_dimension_numbers<[1], [0], [0], [1], [0, 0, 1, 1], [], []>} : vector<16x32xbf16>, vector<32x128xbf16>, vector<16x128xf32> -> vector<16x128xf32>
    %169 = arith.addf %165, %168 : vector<16x128xf32>
    %170 = vector.extract_strided_slice %169 {offsets = [0, 0], sizes = [16, 32], strides = [1, 1]} : vector<16x128xf32> to vector<16x32xf32>
    %cst_57 = arith.constant 5.000000e-01 : f32
    %171 = vector.broadcast %cst_57 : f32 to vector<16x32xf32>
    %172 = arith.mulf %171, %170 : vector<16x32xf32>
    %173 = math.tanh %172 : vector<16x32xf32>
    %cst_58 = arith.constant 5.000000e-01 : f32
    %174 = vector.broadcast %cst_58 : f32 to vector<16x32xf32>
    %175 = arith.mulf %174, %173 : vector<16x32xf32>
    %cst_59 = arith.constant 5.000000e-01 : f32
    %176 = vector.broadcast %cst_59 : f32 to vector<16x32xf32>
    %177 = arith.addf %175, %176 : vector<16x32xf32>
    %178 = vector.extract_strided_slice %169 {offsets = [0, 32], sizes = [16, 32], strides = [1, 1]} : vector<16x128xf32> to vector<16x32xf32>
    %cst_60 = arith.constant 5.000000e-01 : f32
    %179 = vector.broadcast %cst_60 : f32 to vector<16x32xf32>
    %180 = arith.mulf %179, %178 : vector<16x32xf32>
    %181 = math.tanh %180 : vector<16x32xf32>
    %cst_61 = arith.constant 5.000000e-01 : f32
    %182 = vector.broadcast %cst_61 : f32 to vector<16x32xf32>
    %183 = arith.mulf %182, %181 : vector<16x32xf32>
    %cst_62 = arith.constant 5.000000e-01 : f32
    %184 = vector.broadcast %cst_62 : f32 to vector<16x32xf32>
    %185 = arith.addf %183, %184 : vector<16x32xf32>
    %186 = vector.extract_strided_slice %169 {offsets = [0, 64], sizes = [16, 32], strides = [1, 1]} : vector<16x128xf32> to vector<16x32xf32>
    %187 = math.tanh %186 : vector<16x32xf32>
    %188 = vector.extract_strided_slice %169 {offsets = [0, 96], sizes = [16, 32], strides = [1, 1]} : vector<16x128xf32> to vector<16x32xf32>
    %cst_63 = arith.constant 5.000000e-01 : f32
    %189 = vector.broadcast %cst_63 : f32 to vector<16x32xf32>
    %190 = arith.mulf %189, %188 : vector<16x32xf32>
    %191 = math.tanh %190 : vector<16x32xf32>
    %cst_64 = arith.constant 5.000000e-01 : f32
    %192 = vector.broadcast %cst_64 : f32 to vector<16x32xf32>
    %193 = arith.mulf %192, %191 : vector<16x32xf32>
    %cst_65 = arith.constant 5.000000e-01 : f32
    %194 = vector.broadcast %cst_65 : f32 to vector<16x32xf32>
    %195 = arith.addf %193, %194 : vector<16x32xf32>
    %196 = arith.mulf %185, %162 : vector<16x32xf32>
    %197 = arith.mulf %177, %187 : vector<16x32xf32>
    %198 = arith.addf %196, %197 : vector<16x32xf32>
    %199 = math.tanh %198 : vector<16x32xf32>
    %200 = arith.mulf %195, %199 : vector<16x32xf32>
    %201 = arith.truncf %106 : vector<16x32xf32> to vector<16x32xbf16>
    %202 = arith.truncf %200 : vector<16x32xf32> to vector<16x32xbf16>
    %c0_66 = arith.constant 0 : index
    %c0_67 = arith.constant 0 : index
    %203 = vector.load %arg7[%c0_66, %c0_67] : memref<32x32xbf16, #tpu.memory_space<vmem>>, vector<32x32xbf16>
    %cst_68 = arith.constant dense<0.000000e+00> : vector<16x32xf32>
    %204 = tpu.matmul %201, %203, %cst_68 {dimension_numbers = #tpu.dot_dimension_numbers<[1], [0], [0], [1], [0, 0, 1, 1], [], []>} : vector<16x32xbf16>, vector<32x32xbf16>, vector<16x32xf32> -> vector<16x32xf32>
    %c0_69 = arith.constant 0 : index
    %c0_70 = arith.constant 0 : index
    %205 = vector.load %arg8[%c0_69, %c0_70] : memref<32x32xbf16, #tpu.memory_space<vmem>>, vector<32x32xbf16>
    %cst_71 = arith.constant dense<0.000000e+00> : vector<16x32xf32>
    %206 = tpu.matmul %202, %205, %cst_71 {dimension_numbers = #tpu.dot_dimension_numbers<[1], [0], [0], [1], [0, 0, 1, 1], [], []>} : vector<16x32xbf16>, vector<32x32xbf16>, vector<16x32xf32> -> vector<16x32xf32>
    %207 = arith.addf %204, %206 : vector<16x32xf32>
    %c0_72 = arith.constant 0 : index
    %c0_73 = arith.constant 0 : index
    %208 = vector.load %arg9[%c0_72, %c0_73] : memref<1x32xf32, #tpu.memory_space<vmem>>, vector<1x32xf32>
    %209 = vector.broadcast %208 : vector<1x32xf32> to vector<16x32xf32>
    %210 = arith.addf %207, %209 : vector<16x32xf32>
    %c0_74 = arith.constant 0 : index
    %c0_75 = arith.constant 0 : index
    %211 = vector.load %arg11[%c0_74, %c0_75] : memref<32x32xbf16, #tpu.memory_space<vmem>>, vector<32x32xbf16>
    %cst_76 = arith.constant dense<0.000000e+00> : vector<16x32xf32>
    %212 = tpu.matmul %201, %211, %cst_76 {dimension_numbers = #tpu.dot_dimension_numbers<[1], [0], [0], [1], [0, 0, 1, 1], [], []>} : vector<16x32xbf16>, vector<32x32xbf16>, vector<16x32xf32> -> vector<16x32xf32>
    %c0_77 = arith.constant 0 : index
    %c0_78 = arith.constant 0 : index
    %213 = vector.load %arg12[%c0_77, %c0_78] : memref<32x32xbf16, #tpu.memory_space<vmem>>, vector<32x32xbf16>
    %cst_79 = arith.constant dense<0.000000e+00> : vector<16x32xf32>
    %214 = tpu.matmul %202, %213, %cst_79 {dimension_numbers = #tpu.dot_dimension_numbers<[1], [0], [0], [1], [0, 0, 1, 1], [], []>} : vector<16x32xbf16>, vector<32x32xbf16>, vector<16x32xf32> -> vector<16x32xf32>
    %215 = arith.addf %212, %214 : vector<16x32xf32>
    %c0_80 = arith.constant 0 : index
    %c0_81 = arith.constant 0 : index
    %216 = vector.load %arg13[%c0_80, %c0_81] : memref<1x32xf32, #tpu.memory_space<vmem>>, vector<1x32xf32>
    %217 = vector.broadcast %216 : vector<1x32xf32> to vector<16x32xf32>
    %218 = arith.addf %215, %217 : vector<16x32xf32>
    %c0_82 = arith.constant 0 : index
    %c0_83 = arith.constant 0 : index
    %219 = vector.load %arg6[%c0_82, %c0_83] : memref<32x32xbf16, #tpu.memory_space<vmem>>, vector<32x32xbf16>
    %cst_84 = arith.constant dense<0.000000e+00> : vector<16x32xf32>
    %220 = tpu.matmul %3, %219, %cst_84 {dimension_numbers = #tpu.dot_dimension_numbers<[1], [0], [0], [1], [0, 0, 1, 1], [], []>} : vector<16x32xbf16>, vector<32x32xbf16>, vector<16x32xf32> -> vector<16x32xf32>
    %c0_85 = arith.constant 0 : index
    %c0_86 = arith.constant 0 : index
    %221 = vector.load %arg6[%c0_85, %c0_86] : memref<32x32xbf16, #tpu.memory_space<vmem>>, vector<32x32xbf16>
    %cst_87 = arith.constant dense<0.000000e+00> : vector<16x32xf32>
    %222 = tpu.matmul %7, %221, %cst_87 {dimension_numbers = #tpu.dot_dimension_numbers<[1], [0], [0], [1], [0, 0, 1, 1], [], []>} : vector<16x32xbf16>, vector<32x32xbf16>, vector<16x32xf32> -> vector<16x32xf32>
    %c0_88 = arith.constant 0 : index
    %c0_89 = arith.constant 0 : index
    %223 = vector.load %arg10[%c0_88, %c0_89] : memref<32x32xbf16, #tpu.memory_space<vmem>>, vector<32x32xbf16>
    %cst_90 = arith.constant dense<0.000000e+00> : vector<16x32xf32>
    %224 = tpu.matmul %5, %223, %cst_90 {dimension_numbers = #tpu.dot_dimension_numbers<[1], [0], [0], [1], [0, 0, 1, 1], [], []>} : vector<16x32xbf16>, vector<32x32xbf16>, vector<16x32xf32> -> vector<16x32xf32>
    %225 = arith.addf %220, %210 : vector<16x32xf32>
    %cst_91 = arith.constant 0.000000e+00 : f32
    %226 = vector.broadcast %cst_91 : f32 to vector<16x32xf32>
    %227 = arith.maximumf %225, %226 : vector<16x32xf32>
    %c0_92 = arith.constant 0 : index
    %c0_93 = arith.constant 0 : index
    %228 = vector.load %arg14[%c0_92, %c0_93] : memref<16x32xf32, #tpu.memory_space<vmem>>, vector<16x32xf32>
    tpu.vector_store %arg14[%c0_92, %c0_93], %227 {strides = array<i32>} : memref<16x32xf32, #tpu.memory_space<vmem>>, vector<16x32xf32>,
    %229 = arith.addf %222, %210 : vector<16x32xf32>
    %cst_94 = arith.constant 0.000000e+00 : f32
    %230 = vector.broadcast %cst_94 : f32 to vector<16x32xf32>
    %231 = arith.maximumf %229, %230 : vector<16x32xf32>
    %c0_95 = arith.constant 0 : index
    %c0_96 = arith.constant 0 : index
    %232 = vector.load %arg16[%c0_95, %c0_96] : memref<16x32xf32, #tpu.memory_space<vmem>>, vector<16x32xf32>
    tpu.vector_store %arg16[%c0_95, %c0_96], %231 {strides = array<i32>} : memref<16x32xf32, #tpu.memory_space<vmem>>, vector<16x32xf32>,
    %233 = arith.addf %224, %218 : vector<16x32xf32>
    %cst_97 = arith.constant 0.000000e+00 : f32
    %234 = vector.broadcast %cst_97 : f32 to vector<16x32xf32>
    %235 = arith.maximumf %233, %234 : vector<16x32xf32>
    %c0_98 = arith.constant 0 : index
    %c0_99 = arith.constant 0 : index
    %236 = vector.load %arg15[%c0_98, %c0_99] : memref<16x32xf32, #tpu.memory_space<vmem>>, vector<16x32xf32>
    tpu.vector_store %arg15[%c0_98, %c0_99], %235 {strides = array<i32>} : memref<16x32xf32, #tpu.memory_space<vmem>>, vector<16x32xf32>,
    return
  }
  func.func @transform_0(%arg0: i32) -> (i32, i32, i32) {
    %c0_i32 = arith.constant 0 : i32
    %c0_i32_0 = arith.constant 0 : i32
    %c0_i32_1 = arith.constant 0 : i32
    return %c0_i32, %arg0, %c0_i32_0 : i32, i32, i32
  }
  func.func @transform_1(%arg0: i32) -> (i32, i32) {
    %c0_i32 = arith.constant 0 : i32
    %c0_i32_0 = arith.constant 0 : i32
    %c0_i32_1 = arith.constant 0 : i32
    return %c0_i32, %c0_i32_0 : i32, i32
  }
  func.func @transform_2(%arg0: i32) -> (i32, i32) {
    %c0_i32 = arith.constant 0 : i32
    %c0_i32_0 = arith.constant 0 : i32
    %c0_i32_1 = arith.constant 0 : i32
    return %c0_i32, %c0_i32_0 : i32, i32
  }
  func.func @transform_3(%arg0: i32) -> (i32, i32) {
    %c0_i32 = arith.constant 0 : i32
    %c0_i32_0 = arith.constant 0 : i32
    %c0_i32_1 = arith.constant 0 : i32
    return %c0_i32, %c0_i32_0 : i32, i32
  }
  func.func @transform_4(%arg0: i32) -> (i32, i32) {
    %c0_i32 = arith.constant 0 : i32
    %c0_i32_0 = arith.constant 0 : i32
    %c0_i32_1 = arith.constant 0 : i32
    return %c0_i32, %c0_i32_0 : i32, i32
  }
  func.func @transform_5(%arg0: i32) -> (i32, i32) {
    %c0_i32 = arith.constant 0 : i32
    %c0_i32_0 = arith.constant 0 : i32
    %c0_i32_1 = arith.constant 0 : i32
    return %c0_i32, %c0_i32_0 : i32, i32
  }
  func.func @transform_6(%arg0: i32) -> (i32, i32) {
    %c0_i32 = arith.constant 0 : i32
    %c0_i32_0 = arith.constant 0 : i32
    %c0_i32_1 = arith.constant 0 : i32
    return %c0_i32, %c0_i32_0 : i32, i32
  }
  func.func @transform_7(%arg0: i32) -> (i32, i32) {
    %c0_i32 = arith.constant 0 : i32
    %c0_i32_0 = arith.constant 0 : i32
    %c0_i32_1 = arith.constant 0 : i32
    return %c0_i32, %c0_i32_0 : i32, i32
  }
  func.func @transform_8(%arg0: i32) -> (i32, i32) {
    %c0_i32 = arith.constant 0 : i32
    %c0_i32_0 = arith.constant 0 : i32
    %c0_i32_1 = arith.constant 0 : i32
    return %c0_i32, %c0_i32_0 : i32, i32
  }
  func.func @transform_9(%arg0: i32) -> (i32, i32) {
    %c0_i32 = arith.constant 0 : i32
    %c0_i32_0 = arith.constant 0 : i32
    %c0_i32_1 = arith.constant 0 : i32
    return %c0_i32, %c0_i32_0 : i32, i32
  }
  func.func @transform_10(%arg0: i32) -> (i32, i32) {
    %c0_i32 = arith.constant 0 : i32
    %c0_i32_0 = arith.constant 0 : i32
    %c0_i32_1 = arith.constant 0 : i32
    return %c0_i32, %c0_i32_0 : i32, i32
  }
  func.func @transform_11(%arg0: i32) -> (i32, i32) {
    %c0_i32 = arith.constant 0 : i32
    %c0_i32_0 = arith.constant 0 : i32
    %c0_i32_1 = arith.constant 0 : i32
    return %c0_i32, %c0_i32_0 : i32, i32
  }
  func.func @transform_12(%arg0: i32) -> (i32, i32) {
    %c0_i32 = arith.constant 0 : i32
    %c0_i32_0 = arith.constant 0 : i32
    %c0_i32_1 = arith.constant 0 : i32
    return %c0_i32, %c0_i32_0 : i32, i32
  }
  func.func @transform_13(%arg0: i32) -> (i32, i32) {
    %c0_i32 = arith.constant 0 : i32
    %c0_i32_0 = arith.constant 0 : i32
    return %arg0, %c0_i32 : i32, i32
  }
  func.func @transform_14(%arg0: i32) -> (i32, i32) {
    %c0_i32 = arith.constant 0 : i32
    %c0_i32_0 = arith.constant 0 : i32
    return %arg0, %c0_i32 : i32, i32
  }
  func.func @transform_15(%arg0: i32) -> (i32, i32) {
    %c0_i32 = arith.constant 0 : i32
    %c0_i32_0 = arith.constant 0 : i32
    return %arg0, %c0_i32 : i32, i32
  }
}

module attributes {stable_mosaic.version = 11 : i64} {
  func.func @_lstm_structure_kernel(%arg0: i32, %arg1: memref<3x16x32xbf16, #tpu.memory_space<vmem>>, %arg2: memref<32x256xbf16, #tpu.memory_space<vmem>>, %arg3: memref<1x256xf32, #tpu.memory_space<vmem>>, %arg4: memref<32x128xbf16, #tpu.memory_space<vmem>>, %arg5: memref<32x128xbf16, #tpu.memory_space<vmem>>, %arg6: memref<32x32xbf16, #tpu.memory_space<vmem>>, %arg7: memref<32x32xbf16, #tpu.memory_space<vmem>>, %arg8: memref<32x32xbf16, #tpu.memory_space<vmem>>, %arg9: memref<1x32xf32, #tpu.memory_space<vmem>>, %arg10: memref<32x32xbf16, #tpu.memory_space<vmem>>, %arg11: memref<32x32xbf16, #tpu.memory_space<vmem>>, %arg12: memref<32x32xbf16, #tpu.memory_space<vmem>>, %arg13: memref<1x32xf32, #tpu.memory_space<vmem>>, %arg14: memref<16x32xf32, #tpu.memory_space<vmem>>, %arg15: memref<16x32xf32, #tpu.memory_space<vmem>>, %arg16: memref<16x32xf32, #tpu.memory_space<vmem>>) attributes {dimension_semantics = [#tpu.dimension_semantics<parallel>], iteration_bounds = array<i64: 1>, scalar_prefetch = 0 : i64, scratch_operands = 0 : i64, tpu.core_type = #tpu.core_type<tc>, window_params = [{transform_indices = @transform_0, window_bounds = array<i64: 3, 16, 32>}, {pipeline_mode = #tpu.pipeline_mode<synchronous>, transform_indices = @transform_1, window_bounds = array<i64: 32, 256>}, {pipeline_mode = #tpu.pipeline_mode<synchronous>, transform_indices = @transform_2, window_bounds = array<i64: 1, 256>}, {pipeline_mode = #tpu.pipeline_mode<synchronous>, transform_indices = @transform_3, window_bounds = array<i64: 32, 128>}, {pipeline_mode = #tpu.pipeline_mode<synchronous>, transform_indices = @transform_4, window_bounds = array<i64: 32, 128>}, {pipeline_mode = #tpu.pipeline_mode<synchronous>, transform_indices = @transform_5, window_bounds = array<i64: 32, 32>}, {pipeline_mode = #tpu.pipeline_mode<synchronous>, transform_indices = @transform_6, window_bounds = array<i64: 32, 32>}, {pipeline_mode = #tpu.pipeline_mode<synchronous>, transform_indices = @transform_7, window_bounds = array<i64: 32, 32>}, {pipeline_mode = #tpu.pipeline_mode<synchronous>, transform_indices = @transform_8, window_bounds = array<i64: 1, 32>}, {pipeline_mode = #tpu.pipeline_mode<synchronous>, transform_indices = @transform_9, window_bounds = array<i64: 32, 32>}, {pipeline_mode = #tpu.pipeline_mode<synchronous>, transform_indices = @transform_10, window_bounds = array<i64: 32, 32>}, {pipeline_mode = #tpu.pipeline_mode<synchronous>, transform_indices = @transform_11, window_bounds = array<i64: 32, 32>}, {pipeline_mode = #tpu.pipeline_mode<synchronous>, transform_indices = @transform_12, window_bounds = array<i64: 1, 32>}, {transform_indices = @transform_13, window_bounds = array<i64: 16, 32>}, {transform_indices = @transform_14, window_bounds = array<i64: 16, 32>}, {transform_indices = @transform_15, window_bounds = array<i64: 16, 32>}]} {
    %c0 = arith.constant 0 : index
    %c0_0 = arith.constant 0 : index
    %c0_1 = arith.constant 0 : index
    %0 = vector.load %arg1[%c0, %c0_0, %c0_1] : memref<3x16x32xbf16, #tpu.memory_space<vmem>>, vector<3x16x32xbf16>
    %1 = vector.shape_cast %0 : vector<3x16x32xbf16> to vector<48x32xbf16>
    %2 = vector.extract_strided_slice %0 {offsets = [0, 0, 0], sizes = [1, 16, 32], strides = [1, 1, 1]} : vector<3x16x32xbf16> to vector<1x16x32xbf16>
    %3 = vector.shape_cast %2 : vector<1x16x32xbf16> to vector<16x32xbf16>
    %4 = vector.extract_strided_slice %0 {offsets = [1, 0, 0], sizes = [1, 16, 32], strides = [1, 1, 1]} : vector<3x16x32xbf16> to vector<1x16x32xbf16>
    %5 = vector.shape_cast %4 : vector<1x16x32xbf16> to vector<16x32xbf16>
    %6 = vector.extract_strided_slice %0 {offsets = [2, 0, 0], sizes = [1, 16, 32], strides = [1, 1, 1]} : vector<3x16x32xbf16> to vector<1x16x32xbf16>
    %7 = vector.shape_cast %6 : vector<1x16x32xbf16> to vector<16x32xbf16>
    %c0_2 = arith.constant 0 : index
    %c0_3 = arith.constant 0 : index
    %8 = vector.load %arg2[%c0_2, %c0_3] : memref<32x256xbf16, #tpu.memory_space<vmem>>, vector<32x256xbf16>
    %cst = arith.constant dense<0.000000e+00> : vector<48x256xf32>
    %9 = tpu.matmul %1, %8, %cst {dimension_numbers = #tpu.dot_dimension_numbers<[1], [0], [0], [1], [0, 0, 1, 1], [], []>} : vector<48x32xbf16>, vector<32x256xbf16>, vector<48x256xf32> -> vector<48x256xf32>
    %c0_4 = arith.constant 0 : index
    %c0_5 = arith.constant 0 : index
    %10 = vector.load %arg3[%c0_4, %c0_5] : memref<1x256xf32, #tpu.memory_space<vmem>>, vector<1x256xf32>
    %11 = vector.broadcast %10 : vector<1x256xf32> to vector<48x256xf32>
    %12 = arith.addf %9, %11 : vector<48x256xf32>
    %13 = vector.extract_strided_slice %12 {offsets = [0, 0], sizes = [16, 128], strides = [1, 1]} : vector<48x256xf32> to vector<16x128xf32>
    %14 = vector.extract_strided_slice %13 {offsets = [0, 0], sizes = [16, 32], strides = [1, 1]} : vector<16x128xf32> to vector<16x32xf32>
    %cst_6 = arith.constant 5.000000e-01 : f32
    %15 = vector.broadcast %cst_6 : f32 to vector<16x32xf32>
    %16 = arith.mulf %15, %14 : vector<16x32xf32>
    %17 = math.tanh %16 : vector<16x32xf32>
    %cst_7 = arith.constant 5.000000e-01 : f32
    %18 = vector.broadcast %cst_7 : f32 to vector<16x32xf32>
    %19 = arith.mulf %18, %17 : vector<16x32xf32>
    %cst_8 = arith.constant 5.000000e-01 : f32
    %20 = vector.broadcast %cst_8 : f32 to vector<16x32xf32>
    %21 = arith.addf %19, %20 : vector<16x32xf32>
    %22 = vector.extract_strided_slice %13 {offsets = [0, 64], sizes = [16, 32], strides = [1, 1]} : vector<16x128xf32> to vector<16x32xf32>
    %23 = math.tanh %22 : vector<16x32xf32>
    %24 = vector.extract_strided_slice %13 {offsets = [0, 96], sizes = [16, 32], strides = [1, 1]} : vector<16x128xf32> to vector<16x32xf32>
    %cst_9 = arith.constant 5.000000e-01 : f32
    %25 = vector.broadcast %cst_9 : f32 to vector<16x32xf32>
    %26 = arith.mulf %25, %24 : vector<16x32xf32>
    %27 = math.tanh %26 : vector<16x32xf32>
    %cst_10 = arith.constant 5.000000e-01 : f32
    %28 = vector.broadcast %cst_10 : f32 to vector<16x32xf32>
    %29 = arith.mulf %28, %27 : vector<16x32xf32>
    %cst_11 = arith.constant 5.000000e-01 : f32
    %30 = vector.broadcast %cst_11 : f32 to vector<16x32xf32>
    %31 = arith.addf %29, %30 : vector<16x32xf32>
    %32 = arith.mulf %21, %23 : vector<16x32xf32>
    %33 = math.tanh %32 : vector<16x32xf32>
    %34 = arith.mulf %31, %33 : vector<16x32xf32>
    %35 = vector.extract_strided_slice %12 {offsets = [16, 0], sizes = [16, 128], strides = [1, 1]} : vector<48x256xf32> to vector<16x128xf32>
    %c0_12 = arith.constant 0 : index
    %c0_13 = arith.constant 0 : index
    %36 = vector.load %arg4[%c0_12, %c0_13] : memref<32x128xbf16, #tpu.memory_space<vmem>>, vector<32x128xbf16>
    %37 = arith.truncf %34 : vector<16x32xf32> to vector<16x32xbf16>
    %cst_14 = arith.constant dense<0.000000e+00> : vector<16x128xf32>
    %38 = tpu.matmul %37, %36, %cst_14 {dimension_numbers = #tpu.dot_dimension_numbers<[1], [0], [0], [1], [0, 0, 1, 1], [], []>} : vector<16x32xbf16>, vector<32x128xbf16>, vector<16x128xf32> -> vector<16x128xf32>
    %39 = arith.addf %35, %38 : vector<16x128xf32>
    %40 = vector.extract_strided_slice %39 {offsets = [0, 0], sizes = [16, 32], strides = [1, 1]} : vector<16x128xf32> to vector<16x32xf32>
    %cst_15 = arith.constant 5.000000e-01 : f32
    %41 = vector.broadcast %cst_15 : f32 to vector<16x32xf32>
    %42 = arith.mulf %41, %40 : vector<16x32xf32>
    %43 = math.tanh %42 : vector<16x32xf32>
    %cst_16 = arith.constant 5.000000e-01 : f32
    %44 = vector.broadcast %cst_16 : f32 to vector<16x32xf32>
    %45 = arith.mulf %44, %43 : vector<16x32xf32>
    %cst_17 = arith.constant 5.000000e-01 : f32
    %46 = vector.broadcast %cst_17 : f32 to vector<16x32xf32>
    %47 = arith.addf %45, %46 : vector<16x32xf32>
    %48 = vector.extract_strided_slice %39 {offsets = [0, 32], sizes = [16, 32], strides = [1, 1]} : vector<16x128xf32> to vector<16x32xf32>
    %cst_18 = arith.constant 5.000000e-01 : f32
    %49 = vector.broadcast %cst_18 : f32 to vector<16x32xf32>
    %50 = arith.mulf %49, %48 : vector<16x32xf32>
    %51 = math.tanh %50 : vector<16x32xf32>
    %cst_19 = arith.constant 5.000000e-01 : f32
    %52 = vector.broadcast %cst_19 : f32 to vector<16x32xf32>
    %53 = arith.mulf %52, %51 : vector<16x32xf32>
    %cst_20 = arith.constant 5.000000e-01 : f32
    %54 = vector.broadcast %cst_20 : f32 to vector<16x32xf32>
    %55 = arith.addf %53, %54 : vector<16x32xf32>
    %56 = vector.extract_strided_slice %39 {offsets = [0, 64], sizes = [16, 32], strides = [1, 1]} : vector<16x128xf32> to vector<16x32xf32>
    %57 = math.tanh %56 : vector<16x32xf32>
    %58 = vector.extract_strided_slice %39 {offsets = [0, 96], sizes = [16, 32], strides = [1, 1]} : vector<16x128xf32> to vector<16x32xf32>
    %cst_21 = arith.constant 5.000000e-01 : f32
    %59 = vector.broadcast %cst_21 : f32 to vector<16x32xf32>
    %60 = arith.mulf %59, %58 : vector<16x32xf32>
    %61 = math.tanh %60 : vector<16x32xf32>
    %cst_22 = arith.constant 5.000000e-01 : f32
    %62 = vector.broadcast %cst_22 : f32 to vector<16x32xf32>
    %63 = arith.mulf %62, %61 : vector<16x32xf32>
    %cst_23 = arith.constant 5.000000e-01 : f32
    %64 = vector.broadcast %cst_23 : f32 to vector<16x32xf32>
    %65 = arith.addf %63, %64 : vector<16x32xf32>
    %66 = arith.mulf %55, %32 : vector<16x32xf32>
    %67 = arith.mulf %47, %57 : vector<16x32xf32>
    %68 = arith.addf %66, %67 : vector<16x32xf32>
    %69 = math.tanh %68 : vector<16x32xf32>
    %70 = arith.mulf %65, %69 : vector<16x32xf32>
    %71 = vector.extract_strided_slice %12 {offsets = [32, 0], sizes = [16, 128], strides = [1, 1]} : vector<48x256xf32> to vector<16x128xf32>
    %c0_24 = arith.constant 0 : index
    %c0_25 = arith.constant 0 : index
    %72 = vector.load %arg4[%c0_24, %c0_25] : memref<32x128xbf16, #tpu.memory_space<vmem>>, vector<32x128xbf16>
    %73 = arith.truncf %70 : vector<16x32xf32> to vector<16x32xbf16>
    %cst_26 = arith.constant dense<0.000000e+00> : vector<16x128xf32>
    %74 = tpu.matmul %73, %72, %cst_26 {dimension_numbers = #tpu.dot_dimension_numbers<[1], [0], [0], [1], [0, 0, 1, 1], [], []>} : vector<16x32xbf16>, vector<32x128xbf16>, vector<16x128xf32> -> vector<16x128xf32>
    %75 = arith.addf %71, %74 : vector<16x128xf32>
    %76 = vector.extract_strided_slice %75 {offsets = [0, 0], sizes = [16, 32], strides = [1, 1]} : vector<16x128xf32> to vector<16x32xf32>
    %cst_27 = arith.constant 5.000000e-01 : f32
    %77 = vector.broadcast %cst_27 : f32 to vector<16x32xf32>
    %78 = arith.mulf %77, %76 : vector<16x32xf32>
    %79 = math.tanh %78 : vector<16x32xf32>
    %cst_28 = arith.constant 5.000000e-01 : f32
    %80 = vector.broadcast %cst_28 : f32 to vector<16x32xf32>
    %81 = arith.mulf %80, %79 : vector<16x32xf32>
    %cst_29 = arith.constant 5.000000e-01 : f32
    %82 = vector.broadcast %cst_29 : f32 to vector<16x32xf32>
    %83 = arith.addf %81, %82 : vector<16x32xf32>
    %84 = vector.extract_strided_slice %75 {offsets = [0, 32], sizes = [16, 32], strides = [1, 1]} : vector<16x128xf32> to vector<16x32xf32>
    %cst_30 = arith.constant 5.000000e-01 : f32
    %85 = vector.broadcast %cst_30 : f32 to vector<16x32xf32>
    %86 = arith.mulf %85, %84 : vector<16x32xf32>
    %87 = math.tanh %86 : vector<16x32xf32>
    %cst_31 = arith.constant 5.000000e-01 : f32
    %88 = vector.broadcast %cst_31 : f32 to vector<16x32xf32>
    %89 = arith.mulf %88, %87 : vector<16x32xf32>
    %cst_32 = arith.constant 5.000000e-01 : f32
    %90 = vector.broadcast %cst_32 : f32 to vector<16x32xf32>
    %91 = arith.addf %89, %90 : vector<16x32xf32>
    %92 = vector.extract_strided_slice %75 {offsets = [0, 64], sizes = [16, 32], strides = [1, 1]} : vector<16x128xf32> to vector<16x32xf32>
    %93 = math.tanh %92 : vector<16x32xf32>
    %94 = vector.extract_strided_slice %75 {offsets = [0, 96], sizes = [16, 32], strides = [1, 1]} : vector<16x128xf32> to vector<16x32xf32>
    %cst_33 = arith.constant 5.000000e-01 : f32
    %95 = vector.broadcast %cst_33 : f32 to vector<16x32xf32>
    %96 = arith.mulf %95, %94 : vector<16x32xf32>
    %97 = math.tanh %96 : vector<16x32xf32>
    %cst_34 = arith.constant 5.000000e-01 : f32
    %98 = vector.broadcast %cst_34 : f32 to vector<16x32xf32>
    %99 = arith.mulf %98, %97 : vector<16x32xf32>
    %cst_35 = arith.constant 5.000000e-01 : f32
    %100 = vector.broadcast %cst_35 : f32 to vector<16x32xf32>
    %101 = arith.addf %99, %100 : vector<16x32xf32>
    %102 = arith.mulf %91, %68 : vector<16x32xf32>
    %103 = arith.mulf %83, %93 : vector<16x32xf32>
    %104 = arith.addf %102, %103 : vector<16x32xf32>
    %105 = math.tanh %104 : vector<16x32xf32>
    %106 = arith.mulf %101, %105 : vector<16x32xf32>
    %107 = vector.extract_strided_slice %12 {offsets = [32, 128], sizes = [16, 128], strides = [1, 1]} : vector<48x256xf32> to vector<16x128xf32>
    %108 = vector.extract_strided_slice %107 {offsets = [0, 0], sizes = [16, 32], strides = [1, 1]} : vector<16x128xf32> to vector<16x32xf32>
    %cst_36 = arith.constant 5.000000e-01 : f32
    %109 = vector.broadcast %cst_36 : f32 to vector<16x32xf32>
    %110 = arith.mulf %109, %108 : vector<16x32xf32>
    %111 = math.tanh %110 : vector<16x32xf32>
    %cst_37 = arith.constant 5.000000e-01 : f32
    %112 = vector.broadcast %cst_37 : f32 to vector<16x32xf32>
    %113 = arith.mulf %112, %111 : vector<16x32xf32>
    %cst_38 = arith.constant 5.000000e-01 : f32
    %114 = vector.broadcast %cst_38 : f32 to vector<16x32xf32>
    %115 = arith.addf %113, %114 : vector<16x32xf32>
    %116 = vector.extract_strided_slice %107 {offsets = [0, 64], sizes = [16, 32], strides = [1, 1]} : vector<16x128xf32> to vector<16x32xf32>
    %117 = math.tanh %116 : vector<16x32xf32>
    %118 = vector.extract_strided_slice %107 {offsets = [0, 96], sizes = [16, 32], strides = [1, 1]} : vector<16x128xf32> to vector<16x32xf32>
    %cst_39 = arith.constant 5.000000e-01 : f32
    %119 = vector.broadcast %cst_39 : f32 to vector<16x32xf32>
    %120 = arith.mulf %119, %118 : vector<16x32xf32>
    %121 = math.tanh %120 : vector<16x32xf32>
    %cst_40 = arith.constant 5.000000e-01 : f32
    %122 = vector.broadcast %cst_40 : f32 to vector<16x32xf32>
    %123 = arith.mulf %122, %121 : vector<16x32xf32>
    %cst_41 = arith.constant 5.000000e-01 : f32
    %124 = vector.broadcast %cst_41 : f32 to vector<16x32xf32>
    %125 = arith.addf %123, %124 : vector<16x32xf32>
    %126 = arith.mulf %115, %117 : vector<16x32xf32>
    %127 = math.tanh %126 : vector<16x32xf32>
    %128 = arith.mulf %125, %127 : vector<16x32xf32>
    %129 = vector.extract_strided_slice %12 {offsets = [16, 128], sizes = [16, 128], strides = [1, 1]} : vector<48x256xf32> to vector<16x128xf32>
    %c0_42 = arith.constant 0 : index
    %c0_43 = arith.constant 0 : index
    %130 = vector.load %arg5[%c0_42, %c0_43] : memref<32x128xbf16, #tpu.memory_space<vmem>>, vector<32x128xbf16>
    %131 = arith.truncf %128 : vector<16x32xf32> to vector<16x32xbf16>
    %cst_44 = arith.constant dense<0.000000e+00> : vector<16x128xf32>
    %132 = tpu.matmul %131, %130, %cst_44 {dimension_numbers = #tpu.dot_dimension_numbers<[1], [0], [0], [1], [0, 0, 1, 1], [], []>} : vector<16x32xbf16>, vector<32x128xbf16>, vector<16x128xf32> -> vector<16x128xf32>
    %133 = arith.addf %129, %132 : vector<16x128xf32>
    %134 = vector.extract_strided_slice %133 {offsets = [0, 0], sizes = [16, 32], strides = [1, 1]} : vector<16x128xf32> to vector<16x32xf32>
    %cst_45 = arith.constant 5.000000e-01 : f32
    %135 = vector.broadcast %cst_45 : f32 to vector<16x32xf32>
    %136 = arith.mulf %135, %134 : vector<16x32xf32>
    %137 = math.tanh %136 : vector<16x32xf32>
    %cst_46 = arith.constant 5.000000e-01 : f32
    %138 = vector.broadcast %cst_46 : f32 to vector<16x32xf32>
    %139 = arith.mulf %138, %137 : vector<16x32xf32>
    %cst_47 = arith.constant 5.000000e-01 : f32
    %140 = vector.broadcast %cst_47 : f32 to vector<16x32xf32>
    %141 = arith.addf %139, %140 : vector<16x32xf32>
    %142 = vector.extract_strided_slice %133 {offsets = [0, 32], sizes = [16, 32], strides = [1, 1]} : vector<16x128xf32> to vector<16x32xf32>
    %cst_48 = arith.constant 5.000000e-01 : f32
    %143 = vector.broadcast %cst_48 : f32 to vector<16x32xf32>
    %144 = arith.mulf %143, %142 : vector<16x32xf32>
    %145 = math.tanh %144 : vector<16x32xf32>
    %cst_49 = arith.constant 5.000000e-01 : f32
    %146 = vector.broadcast %cst_49 : f32 to vector<16x32xf32>
    %147 = arith.mulf %146, %145 : vector<16x32xf32>
    %cst_50 = arith.constant 5.000000e-01 : f32
    %148 = vector.broadcast %cst_50 : f32 to vector<16x32xf32>
    %149 = arith.addf %147, %148 : vector<16x32xf32>
    %150 = vector.extract_strided_slice %133 {offsets = [0, 64], sizes = [16, 32], strides = [1, 1]} : vector<16x128xf32> to vector<16x32xf32>
    %151 = math.tanh %150 : vector<16x32xf32>
    %152 = vector.extract_strided_slice %133 {offsets = [0, 96], sizes = [16, 32], strides = [1, 1]} : vector<16x128xf32> to vector<16x32xf32>
    %cst_51 = arith.constant 5.000000e-01 : f32
    %153 = vector.broadcast %cst_51 : f32 to vector<16x32xf32>
    %154 = arith.mulf %153, %152 : vector<16x32xf32>
    %155 = math.tanh %154 : vector<16x32xf32>
    %cst_52 = arith.constant 5.000000e-01 : f32
    %156 = vector.broadcast %cst_52 : f32 to vector<16x32xf32>
    %157 = arith.mulf %156, %155 : vector<16x32xf32>
    %cst_53 = arith.constant 5.000000e-01 : f32
    %158 = vector.broadcast %cst_53 : f32 to vector<16x32xf32>
    %159 = arith.addf %157, %158 : vector<16x32xf32>
    %160 = arith.mulf %149, %126 : vector<16x32xf32>
    %161 = arith.mulf %141, %151 : vector<16x32xf32>
    %162 = arith.addf %160, %161 : vector<16x32xf32>
    %163 = math.tanh %162 : vector<16x32xf32>
    %164 = arith.mulf %159, %163 : vector<16x32xf32>
    %165 = vector.extract_strided_slice %12 {offsets = [0, 128], sizes = [16, 128], strides = [1, 1]} : vector<48x256xf32> to vector<16x128xf32>
    %c0_54 = arith.constant 0 : index
    %c0_55 = arith.constant 0 : index
    %166 = vector.load %arg5[%c0_54, %c0_55] : memref<32x128xbf16, #tpu.memory_space<vmem>>, vector<32x128xbf16>
    %167 = arith.truncf %164 : vector<16x32xf32> to vector<16x32xbf16>
    %cst_56 = arith.constant dense<0.000000e+00> : vector<16x128xf32>
    %168 = tpu.matmul %167, %166, %cst_56 {dimension_numbers = #tpu.dot_dimension_numbers<[1], [0], [0], [1], [0, 0, 1, 1], [], []>} : vector<16x32xbf16>, vector<32x128xbf16>, vector<16x128xf32> -> vector<16x128xf32>
    %169 = arith.addf %165, %168 : vector<16x128xf32>
    %170 = vector.extract_strided_slice %169 {offsets = [0, 0], sizes = [16, 32], strides = [1, 1]} : vector<16x128xf32> to vector<16x32xf32>
    %cst_57 = arith.constant 5.000000e-01 : f32
    %171 = vector.broadcast %cst_57 : f32 to vector<16x32xf32>
    %172 = arith.mulf %171, %170 : vector<16x32xf32>
    %173 = math.tanh %172 : vector<16x32xf32>
    %cst_58 = arith.constant 5.000000e-01 : f32
    %174 = vector.broadcast %cst_58 : f32 to vector<16x32xf32>
    %175 = arith.mulf %174, %173 : vector<16x32xf32>
    %cst_59 = arith.constant 5.000000e-01 : f32
    %176 = vector.broadcast %cst_59 : f32 to vector<16x32xf32>
    %177 = arith.addf %175, %176 : vector<16x32xf32>
    %178 = vector.extract_strided_slice %169 {offsets = [0, 32], sizes = [16, 32], strides = [1, 1]} : vector<16x128xf32> to vector<16x32xf32>
    %cst_60 = arith.constant 5.000000e-01 : f32
    %179 = vector.broadcast %cst_60 : f32 to vector<16x32xf32>
    %180 = arith.mulf %179, %178 : vector<16x32xf32>
    %181 = math.tanh %180 : vector<16x32xf32>
    %cst_61 = arith.constant 5.000000e-01 : f32
    %182 = vector.broadcast %cst_61 : f32 to vector<16x32xf32>
    %183 = arith.mulf %182, %181 : vector<16x32xf32>
    %cst_62 = arith.constant 5.000000e-01 : f32
    %184 = vector.broadcast %cst_62 : f32 to vector<16x32xf32>
    %185 = arith.addf %183, %184 : vector<16x32xf32>
    %186 = vector.extract_strided_slice %169 {offsets = [0, 64], sizes = [16, 32], strides = [1, 1]} : vector<16x128xf32> to vector<16x32xf32>
    %187 = math.tanh %186 : vector<16x32xf32>
    %188 = vector.extract_strided_slice %169 {offsets = [0, 96], sizes = [16, 32], strides = [1, 1]} : vector<16x128xf32> to vector<16x32xf32>
    %cst_63 = arith.constant 5.000000e-01 : f32
    %189 = vector.broadcast %cst_63 : f32 to vector<16x32xf32>
    %190 = arith.mulf %189, %188 : vector<16x32xf32>
    %191 = math.tanh %190 : vector<16x32xf32>
    %cst_64 = arith.constant 5.000000e-01 : f32
    %192 = vector.broadcast %cst_64 : f32 to vector<16x32xf32>
    %193 = arith.mulf %192, %191 : vector<16x32xf32>
    %cst_65 = arith.constant 5.000000e-01 : f32
    %194 = vector.broadcast %cst_65 : f32 to vector<16x32xf32>
    %195 = arith.addf %193, %194 : vector<16x32xf32>
    %196 = arith.mulf %185, %162 : vector<16x32xf32>
    %197 = arith.mulf %177, %187 : vector<16x32xf32>
    %198 = arith.addf %196, %197 : vector<16x32xf32>
    %199 = math.tanh %198 : vector<16x32xf32>
    %200 = arith.mulf %195, %199 : vector<16x32xf32>
    %201 = arith.truncf %106 : vector<16x32xf32> to vector<16x32xbf16>
    %202 = arith.truncf %200 : vector<16x32xf32> to vector<16x32xbf16>
    %c0_66 = arith.constant 0 : index
    %c0_67 = arith.constant 0 : index
    %203 = vector.load %arg7[%c0_66, %c0_67] : memref<32x32xbf16, #tpu.memory_space<vmem>>, vector<32x32xbf16>
    %cst_68 = arith.constant dense<0.000000e+00> : vector<16x32xf32>
    %204 = tpu.matmul %201, %203, %cst_68 {dimension_numbers = #tpu.dot_dimension_numbers<[1], [0], [0], [1], [0, 0, 1, 1], [], []>} : vector<16x32xbf16>, vector<32x32xbf16>, vector<16x32xf32> -> vector<16x32xf32>
    %c0_69 = arith.constant 0 : index
    %c0_70 = arith.constant 0 : index
    %205 = vector.load %arg8[%c0_69, %c0_70] : memref<32x32xbf16, #tpu.memory_space<vmem>>, vector<32x32xbf16>
    %cst_71 = arith.constant dense<0.000000e+00> : vector<16x32xf32>
    %206 = tpu.matmul %202, %205, %cst_71 {dimension_numbers = #tpu.dot_dimension_numbers<[1], [0], [0], [1], [0, 0, 1, 1], [], []>} : vector<16x32xbf16>, vector<32x32xbf16>, vector<16x32xf32> -> vector<16x32xf32>
    %207 = arith.addf %204, %206 : vector<16x32xf32>
    %c0_72 = arith.constant 0 : index
    %c0_73 = arith.constant 0 : index
    %208 = vector.load %arg9[%c0_72, %c0_73] : memref<1x32xf32, #tpu.memory_space<vmem>>, vector<1x32xf32>
    %209 = vector.broadcast %208 : vector<1x32xf32> to vector<16x32xf32>
    %210 = arith.addf %207, %209 : vector<16x32xf32>
    %c0_74 = arith.constant 0 : index
    %c0_75 = arith.constant 0 : index
    %211 = vector.load %arg11[%c0_74, %c0_75] : memref<32x32xbf16, #tpu.memory_space<vmem>>, vector<32x32xbf16>
    %cst_76 = arith.constant dense<0.000000e+00> : vector<16x32xf32>
    %212 = tpu.matmul %201, %211, %cst_76 {dimension_numbers = #tpu.dot_dimension_numbers<[1], [0], [0], [1], [0, 0, 1, 1], [], []>} : vector<16x32xbf16>, vector<32x32xbf16>, vector<16x32xf32> -> vector<16x32xf32>
    %c0_77 = arith.constant 0 : index
    %c0_78 = arith.constant 0 : index
    %213 = vector.load %arg12[%c0_77, %c0_78] : memref<32x32xbf16, #tpu.memory_space<vmem>>, vector<32x32xbf16>
    %cst_79 = arith.constant dense<0.000000e+00> : vector<16x32xf32>
    %214 = tpu.matmul %202, %213, %cst_79 {dimension_numbers = #tpu.dot_dimension_numbers<[1], [0], [0], [1], [0, 0, 1, 1], [], []>} : vector<16x32xbf16>, vector<32x32xbf16>, vector<16x32xf32> -> vector<16x32xf32>
    %215 = arith.addf %212, %214 : vector<16x32xf32>
    %c0_80 = arith.constant 0 : index
    %c0_81 = arith.constant 0 : index
    %216 = vector.load %arg13[%c0_80, %c0_81] : memref<1x32xf32, #tpu.memory_space<vmem>>, vector<1x32xf32>
    %217 = vector.broadcast %216 : vector<1x32xf32> to vector<16x32xf32>
    %218 = arith.addf %215, %217 : vector<16x32xf32>
    %c0_82 = arith.constant 0 : index
    %c0_83 = arith.constant 0 : index
    %219 = vector.load %arg6[%c0_82, %c0_83] : memref<32x32xbf16, #tpu.memory_space<vmem>>, vector<32x32xbf16>
    %cst_84 = arith.constant dense<0.000000e+00> : vector<16x32xf32>
    %220 = tpu.matmul %3, %219, %cst_84 {dimension_numbers = #tpu.dot_dimension_numbers<[1], [0], [0], [1], [0, 0, 1, 1], [], []>} : vector<16x32xbf16>, vector<32x32xbf16>, vector<16x32xf32> -> vector<16x32xf32>
    %c0_85 = arith.constant 0 : index
    %c0_86 = arith.constant 0 : index
    %221 = vector.load %arg6[%c0_85, %c0_86] : memref<32x32xbf16, #tpu.memory_space<vmem>>, vector<32x32xbf16>
    %cst_87 = arith.constant dense<0.000000e+00> : vector<16x32xf32>
    %222 = tpu.matmul %7, %221, %cst_87 {dimension_numbers = #tpu.dot_dimension_numbers<[1], [0], [0], [1], [0, 0, 1, 1], [], []>} : vector<16x32xbf16>, vector<32x32xbf16>, vector<16x32xf32> -> vector<16x32xf32>
    %c0_88 = arith.constant 0 : index
    %c0_89 = arith.constant 0 : index
    %223 = vector.load %arg10[%c0_88, %c0_89] : memref<32x32xbf16, #tpu.memory_space<vmem>>, vector<32x32xbf16>
    %cst_90 = arith.constant dense<0.000000e+00> : vector<16x32xf32>
    %224 = tpu.matmul %5, %223, %cst_90 {dimension_numbers = #tpu.dot_dimension_numbers<[1], [0], [0], [1], [0, 0, 1, 1], [], []>} : vector<16x32xbf16>, vector<32x32xbf16>, vector<16x32xf32> -> vector<16x32xf32>
    %225 = arith.addf %220, %210 : vector<16x32xf32>
    %cst_91 = arith.constant 0.000000e+00 : f32
    %226 = vector.broadcast %cst_91 : f32 to vector<16x32xf32>
    %227 = arith.maximumf %225, %226 : vector<16x32xf32>
    %c0_92 = arith.constant 0 : index
    %c0_93 = arith.constant 0 : index
    %228 = vector.load %arg14[%c0_92, %c0_93] : memref<16x32xf32, #tpu.memory_space<vmem>>, vector<16x32xf32>
    tpu.vector_store %arg14[%c0_92, %c0_93], %227 {strides = array<i32>} : memref<16x32xf32, #tpu.memory_space<vmem>>, vector<16x32xf32>,
    %229 = arith.addf %222, %210 : vector<16x32xf32>
    %cst_94 = arith.constant 0.000000e+00 : f32
    %230 = vector.broadcast %cst_94 : f32 to vector<16x32xf32>
    %231 = arith.maximumf %229, %230 : vector<16x32xf32>
    %c0_95 = arith.constant 0 : index
    %c0_96 = arith.constant 0 : index
    %232 = vector.load %arg16[%c0_95, %c0_96] : memref<16x32xf32, #tpu.memory_space<vmem>>, vector<16x32xf32>
    tpu.vector_store %arg16[%c0_95, %c0_96], %231 {strides = array<i32>} : memref<16x32xf32, #tpu.memory_space<vmem>>, vector<16x32xf32>,
    %233 = arith.addf %224, %218 : vector<16x32xf32>
    %cst_97 = arith.constant 0.000000e+00 : f32
    %234 = vector.broadcast %cst_97 : f32 to vector<16x32xf32>
    %235 = arith.maximumf %233, %234 : vector<16x32xf32>
    %c0_98 = arith.constant 0 : index
    %c0_99 = arith.constant 0 : index
    %236 = vector.load %arg15[%c0_98, %c0_99] : memref<16x32xf32, #tpu.memory_space<vmem>>, vector<16x32xf32>
    tpu.vector_store %arg15[%c0_98, %c0_99], %235 {strides = array<i32>} : memref<16x32xf32, #tpu.memory_space<vmem>>, vector<16x32xf32>,
    return
  }
  func.func @transform_0(%arg0: i32) -> (i32, i32, i32) {
    %c0_i32 = arith.constant 0 : i32
    %c0_i32_0 = arith.constant 0 : i32
    %c0_i32_1 = arith.constant 0 : i32
    return %c0_i32, %arg0, %c0_i32_0 : i32, i32, i32
  }
  func.func @transform_1(%arg0: i32) -> (i32, i32) {
    %c0_i32 = arith.constant 0 : i32
    %c0_i32_0 = arith.constant 0 : i32
    %c0_i32_1 = arith.constant 0 : i32
    return %c0_i32, %c0_i32_0 : i32, i32
  }
  func.func @transform_2(%arg0: i32) -> (i32, i32) {
    %c0_i32 = arith.constant 0 : i32
    %c0_i32_0 = arith.constant 0 : i32
    %c0_i32_1 = arith.constant 0 : i32
    return %c0_i32, %c0_i32_0 : i32, i32
  }
  func.func @transform_3(%arg0: i32) -> (i32, i32) {
    %c0_i32 = arith.constant 0 : i32
    %c0_i32_0 = arith.constant 0 : i32
    %c0_i32_1 = arith.constant 0 : i32
    return %c0_i32, %c0_i32_0 : i32, i32
  }
  func.func @transform_4(%arg0: i32) -> (i32, i32) {
    %c0_i32 = arith.constant 0 : i32
    %c0_i32_0 = arith.constant 0 : i32
    %c0_i32_1 = arith.constant 0 : i32
    return %c0_i32, %c0_i32_0 : i32, i32
  }
  func.func @transform_5(%arg0: i32) -> (i32, i32) {
    %c0_i32 = arith.constant 0 : i32
    %c0_i32_0 = arith.constant 0 : i32
    %c0_i32_1 = arith.constant 0 : i32
    return %c0_i32, %c0_i32_0 : i32, i32
  }
  func.func @transform_6(%arg0: i32) -> (i32, i32) {
    %c0_i32 = arith.constant 0 : i32
    %c0_i32_0 = arith.constant 0 : i32
    %c0_i32_1 = arith.constant 0 : i32
    return %c0_i32, %c0_i32_0 : i32, i32
  }
  func.func @transform_7(%arg0: i32) -> (i32, i32) {
    %c0_i32 = arith.constant 0 : i32
    %c0_i32_0 = arith.constant 0 : i32
    %c0_i32_1 = arith.constant 0 : i32
    return %c0_i32, %c0_i32_0 : i32, i32
  }
  func.func @transform_8(%arg0: i32) -> (i32, i32) {
    %c0_i32 = arith.constant 0 : i32
    %c0_i32_0 = arith.constant 0 : i32
    %c0_i32_1 = arith.constant 0 : i32
    return %c0_i32, %c0_i32_0 : i32, i32
  }
  func.func @transform_9(%arg0: i32) -> (i32, i32) {
    %c0_i32 = arith.constant 0 : i32
    %c0_i32_0 = arith.constant 0 : i32
    %c0_i32_1 = arith.constant 0 : i32
    return %c0_i32, %c0_i32_0 : i32, i32
  }
  func.func @transform_10(%arg0: i32) -> (i32, i32) {
    %c0_i32 = arith.constant 0 : i32
    %c0_i32_0 = arith.constant 0 : i32
    %c0_i32_1 = arith.constant 0 : i32
    return %c0_i32, %c0_i32_0 : i32, i32
  }
  func.func @transform_11(%arg0: i32) -> (i32, i32) {
    %c0_i32 = arith.constant 0 : i32
    %c0_i32_0 = arith.constant 0 : i32
    %c0_i32_1 = arith.constant 0 : i32
    return %c0_i32, %c0_i32_0 : i32, i32
  }
  func.func @transform_12(%arg0: i32) -> (i32, i32) {
    %c0_i32 = arith.constant 0 : i32
    %c0_i32_0 = arith.constant 0 : i32
    %c0_i32_1 = arith.constant 0 : i32
    return %c0_i32, %c0_i32_0 : i32, i32
  }
  func.func @transform_13(%arg0: i32) -> (i32, i32) {
    %c0_i32 = arith.constant 0 : i32
    %c0_i32_0 = arith.constant 0 : i32
    return %arg0, %c0_i32 : i32, i32
  }
  func.func @transform_14(%arg0: i32) -> (i32, i32) {
    %c0_i32 = arith.constant 0 : i32
    %c0_i32_0 = arith.constant 0 : i32
    return %arg0, %c0_i32 : i32, i32
  }
  func.func @transform_15(%arg0: i32) -> (i32, i32) {
    %c0_i32 = arith.constant 0 : i32
    %c0_i32_0 = arith.constant 0 : i32
    return %arg0, %c0_i32 : i32, i32
  }
}

</mosaic_0001>

<bundles_post_ra>
// kernel: tpu_custom_call.1
= control target key start
LH: loop header
LB: loop body
LE: loop exit
PB: predicated region body
PF: predicated region fallthrough
CT: control target
= control target key end

     0   :  { %21 = vsyncpa [#allocation3], 0  ;;  %s1892_s0 = inlined_call_operand.hbm [shape: bf16[3,16,32], index: 0, kind: input, shape index: {}]   ;;  %s1893_s1 = inlined_call_operand.hbm [shape: bf16[32,256], index: 1, kind: input, shape index: {}]   ;;  %s1894_s2 = inlined_call_operand.hbm [shape: f32[1,256], index: 2, kind: input, shape index: {}]   ;;  %s1895_s3 = inlined_call_operand.hbm [shape: bf16[32,128], index: 3, kind: input, shape index: {}]   ;;  %s1896_s4 = inlined_call_operand.hbm [shape: bf16[32,128], index: 4, kind: input, shape index: {}]   ;;  %s1897_s5 = inlined_call_operand.hbm [shape: bf16[32,32], index: 5, kind: input, shape index: {}]   ;;  %s1898_s6 = inlined_call_operand.hbm [shape: bf16[32,32], index: 6, kind: input, shape index: {}]   ;;  %s1899_s7 = inlined_call_operand.hbm [shape: bf16[32,32], index: 7, kind: input, shape index: {}]   ;;  %s1900_s8 = inlined_call_operand.vmem [shape: f32[1,32], index: 8, kind: input, shape index: {}]   ;;  %s1901_s9 = inlined_call_operand.hbm [shape: bf16[32,32], index: 9, kind: input, shape index: {}]   ;;  %s1902_s10 = inlined_call_operand.hbm [shape: bf16[32,32], index: 10, kind: input, shape index: {}]   ;;  %s1903_s11 = inlined_call_operand.hbm [shape: bf16[32,32], index: 11, kind: input, shape index: {}]   ;;  %s1904_s12 = inlined_call_operand.vmem [shape: f32[1,32], index: 12, kind: input, shape index: {}]   ;;  %s1905_s13 = inlined_call_operand.hbm [shape: f32[16,32], index: 13, kind: output, shape index: {0}]   ;;  %s1906_s14 = inlined_call_operand.hbm [shape: f32[16,32], index: 14, kind: output, shape index: {1}]   ;;  %s1907_s15 = inlined_call_operand.hbm [shape: f32[16,32], index: 15, kind: output, shape index: {2}]  }
   0x1   :  { %22 = vsyncpa [#allocation6], 0 }
   0x2   :  { %23 = vsyncpa [#allocation9], 0 }
   0x3   :  { %24 = vsyncpa [#allocation12], 0 }
   0x4   :  { %25 = vsyncpa [#allocation15], 0 }
   0x5   :  { %26 = vsyncpa [#allocation18], 0 }
   0x6   :  { %27 = vsyncpa [#allocation4], 0  ;;  %s46_s20 = sshll.u32 %s1893_s1, 4  ;;  %s47_s20 = int_to_ptr.hbm [resolvable:$true] %s46_s20 }
   0x7   :  { %28 = vsyncpa [#allocation22], 0  ;;  %s1577_s21 = smov [#allocation5]   ;;  %s1578_s23 = smov 128  }
   0x8   :  { %s48_s22 = sshll.u32 %s1577_s21, 4  ;;  %s1579_s24 = smov 8   ;;  %s49_s22 = int_to_ptr.vmem [resolvable:$true] %s48_s22 }
   0x9   :  { %54 = dma.hbm_to_vmem [thread:$0]  %s47_s20, 512, %s49_s22, [#allocation6], %s1578_s23, %s1578_s23, %s1579_s24  }
   0xa   :  { %s70_s27 = sshll.u32 %s1895_s3, 4  ;;  %s1580_s28 = smov [#allocation8]   ;;  %s71_s27 = int_to_ptr.hbm [resolvable:$true] %s70_s27 }
   0xb   :  { %s72_s29 = sshll.u32 %s1580_s28, 4  ;;  %s96_s16 = sshll.u32 %s1897_s5, 4  ;;  %s73_s29 = int_to_ptr.vmem [resolvable:$true] %s72_s29  ;;  %s97_s16 = int_to_ptr.hbm [resolvable:$true] %s96_s16 }
   0xc   :  { %s1581_s17 = smov 64   ;;  %s1582_s18 = smov 4  }
   0xd   :  { %78 = dma.hbm_to_vmem [thread:$0]  %s71_s27, 256, %s73_s29, [#allocation9], %s1581_s17, %s1581_s17, %s1582_s18  }
   0xe   :  { %s122_s21 = sshll.u32 %s1899_s7, 4  ;;  %s1583_s3 = smov [#allocation11]   ;;  %s123_s21 = int_to_ptr.hbm [resolvable:$true] %s122_s21 }
   0xf   :  { %s98_s22 = sshll.u32 %s1583_s3, 4  ;;  %s1584_s5 = smov [#allocation14]   ;;  %s99_s22 = int_to_ptr.vmem [resolvable:$true] %s98_s22 }
  0x10   :  { %104 = dma.hbm_to_vmem [thread:$0]  %s97_s16, 256, %s99_s22, [#allocation12], %s1581_s17, %s1581_s17, %s1582_s18  }
  0x11   :  { %s124_s25 = sshll.u32 %s1584_s5, 4  ;;  %s150_s30 = sshll.u32 %s1902_s10, 4  ;;  %s125_s25 = int_to_ptr.vmem [resolvable:$true] %s124_s25  ;;  %s151_s30 = int_to_ptr.hbm [resolvable:$true] %s150_s30 }
  0x12   :  { %130 = dma.hbm_to_vmem [thread:$0]  %s123_s21, 256, %s125_s25, [#allocation15], %s1581_s17, %s1581_s17, %s1582_s18  }
  0x13   :  { %s33_s29 = sshll.u32 %s1892_s0, 4  ;;  %s1585_s1 = smov [#allocation17]   ;;  %s34_s29 = int_to_ptr.hbm [resolvable:$true] %s33_s29 }
  0x14   :  { %s152_s19 = sshll.u32 %s1585_s1, 4  ;;  %s1586_s16 = smov [#allocation2]   ;;  %s153_s19 = int_to_ptr.vmem [resolvable:$true] %s152_s19 }
  0x15   :  { %158 = dma.hbm_to_vmem [thread:$0]  %s151_s30, 256, %s153_s19, [#allocation18], %s1581_s17, %s1581_s17, %s1582_s18  }
  0x16   :  { %s35_s10 = sshll.u32 %s1586_s16, 4  ;;  %s60_s22 = sshll.u32 %s1894_s2, 4  ;;  %s36_s10 = int_to_ptr.vmem [resolvable:$true] %s35_s10  ;;  %s61_s22 = int_to_ptr.hbm [resolvable:$true] %s60_s22 }
  0x17   :  { %41 = dma.hbm_to_vmem [thread:$0]  %s34_s29, 384, %s36_s10, [#allocation3], %s1581_s17, %s1581_s17, %s1582_s18  }
  0x18   :  { %s83_s5 = sshll.u32 %s1896_s4, 4  ;;  %s1587_s25 = smov [#allocation7]   ;;  %s84_s5 = int_to_ptr.hbm [resolvable:$true] %s83_s5 }
  0x19   :  { %s62_s26 = sshll.u32 %s1587_s25, 4  ;;  %s1588_s28 = smov [#allocation10]   ;;  %s63_s26 = int_to_ptr.vmem [resolvable:$true] %s62_s26 }
  0x1a   :  { %65 = dma.hbm_to_vmem [thread:$0]  %s61_s22, 32, %s63_s26, [#allocation6]  }
  0x1b   :  { %s85_s30 = sshll.u32 %s1588_s28, 4  ;;  %s109_s2 = sshll.u32 %s1898_s6, 4  ;;  %s86_s30 = int_to_ptr.vmem [resolvable:$true] %s85_s30  ;;  %s110_s2 = int_to_ptr.hbm [resolvable:$true] %s109_s2 }
  0x1c   :  { %91 = dma.hbm_to_vmem [thread:$0]  %s84_s5, 256, %s86_s30, [#allocation9], %s1581_s17, %s1581_s17, %s1582_s18  }
  0x1d   :  { %s137_s4 = sshll.u32 %s1901_s9, 4  ;;  %s1589_s19 = smov [#allocation13]   ;;  %s138_s4 = int_to_ptr.hbm [resolvable:$true] %s137_s4 }
  0x1e   :  { %s111_s16 = sshll.u32 %s1589_s19, 4  ;;  %s1590_s10 = smov [#allocation16]   ;;  %s112_s16 = int_to_ptr.vmem [resolvable:$true] %s111_s16 }
  0x1f   :  { %117 = dma.hbm_to_vmem [thread:$0]  %s110_s2, 256, %s112_s16, [#allocation12], %s1581_s17, %s1581_s17, %s1582_s18  }
  0x20   :  { %s139_s6 = sshll.u32 %s1590_s10, 4  ;;  %s163_s22 = sshll.u32 %s1903_s11, 4  ;;  %s140_s6 = int_to_ptr.vmem [resolvable:$true] %s139_s6  ;;  %s164_s22 = int_to_ptr.hbm [resolvable:$true] %s163_s22 }
  0x21   :  { %145 = dma.hbm_to_vmem [thread:$0]  %s138_s4, 256, %s140_s6, [#allocation15], %s1581_s17, %s1581_s17, %s1582_s18  }
  0x22   :  { %s1591_s9 = smov [#allocation19]  }
  0x23   :  { %s165_s0 = sshll.u32 %s1591_s9, 4  ;;  %s166_s0 = int_to_ptr.vmem [resolvable:$true] %s165_s0 }
  0x24   :  { %171 = dma.hbm_to_vmem [thread:$0]  %s164_s22, 256, %s166_s0, [#allocation18], %s1581_s17, %s1581_s17, %s1582_s18  }
  0x25   :  { %1561 = dma.done.wait [#allocation3], 384  }
  0x26   :  { %1562 = vsyncadd [#allocation3], 4294966912 }
  0x27   :  { %1563 = dma.done.wait [#allocation6], 544  }
  0x28   :  { %1564 = vsyncadd [#allocation6], 4294966752 }
  0x29   :  { %1565 = dma.done.wait [#allocation9], 512  }
  0x2a   :  { %1566 = vsyncadd [#allocation9], 4294966784 }
  0x2b   :  { %1567 = dma.done.wait [#allocation12], 512  }
  0x2c   :  { %1568 = vsyncadd [#allocation12], 4294966784 }
  0x2d   :  { %1569 = dma.done.wait [#allocation15], 512  }
  0x2e   :  { %1570 = vsyncadd [#allocation15], 4294966784 }
  0x2f   :  { %1571 = dma.done.wait [#allocation18], 512  }
  0x30   :  { %1572 = vsyncadd [#allocation18], 4294966784  ;;  %v1021_v0 = vld [vmem:[#allocation5 + $0x10] sm:$0xf]  ;;  %v1114_v1 = vld [vmem:[#allocation5 + $0x14] sm:$0xf0] }
  0x31   :  { %v1113_v2 = vld [vmem:[#allocation5 + $0x14] sm:$0xf]  ;;  %v1022_v3 = vor.u32 %v1114_v1, %v1021_v0  ;;  %v1023_v4 = vld [vmem:[#allocation5 + $0x18] sm:$0xf0]  ;;  %v1013_v5 = vld [vmem:[#allocation5] sm:$0xf] }
  0x32   :  { %v1112_v6 = vld [vmem:[#allocation5 + $0x4] sm:$0xf0]  ;;  %v1026_v7 = vor.u32 %v1113_v2, %v1023_v4  ;;  %v1111_v8 = vld [vmem:[#allocation5 + $0x4] sm:$0xf]  ;;  %v1015_v9 = vld [vmem:[#allocation5 + $0x8] sm:$0xf0] }
  0x33   :  { %286 = vmatpush.bf16.msra.mxu0 %v1022_v3  ;;  %v1014_v10 = vor.u32 %v1112_v6, %v1013_v5  ;;  %v1018_v11 = vor.u32 %v1111_v8, %v1015_v9  ;;  %v1740_v12 = vld [vmem:[#allocation2] sm:$0xff]  ;;  %vm270_vm0 = vcmask 261120   ;;  %v1746_v13 = vld [vmem:[#allocation2 + $0x8] sm:$0xff]  ;;  %v1752_v14 = vld [vmem:[#allocation2 + $0x10] sm:$0xff]  ;;  %s1592_s11 = smov 96   ;;  %s1593_s18 = smov 32  }
  0x34   :  { %310 = vmatpush.bf16.msra.mxu1 %v1026_v7  ;;  %v229_v15 = vld [vmem:[#allocation7] sm:$0x3]  ;;  %v1116_v7 = vld [vmem:[#allocation8 + $0x8] sm:$0xff]  ;;  %v1115_v8 = vld [vmem:[#allocation8] sm:$0xff]  ;;  %s959_s30 = sshll.u32 %s1906_s14, 4  ;;  %s1595_s7 = smov [#allocation23]   ;;  %s960_s30 = int_to_ptr.hbm [resolvable:$true] %s959_s30 }
  0x35   :  { %v1758_v16 = vperm.slane %v229_v15, 0  ;;  %v232_v17 = vperm.slane %v229_v15, 1  ;;  %389 = vmatpush.bf16.msra.mxu2 %v1116_v7  ;;  %464 = vmatpush.bf16.msra.mxu3 %v1116_v7  ;;  %s970_s27 = sshll.u32 %s1595_s7, 4  ;;  %s972_s1 = sshll.u32 %s1907_s15, 4  ;;  %s971_s27 = int_to_ptr.vmem [resolvable:$true] %s970_s27  ;;  %s973_s1 = int_to_ptr.hbm [resolvable:$true] %s972_s1 }
  0x36   :  { %s1596_s4 = smov [#allocation20]   ;;  %s946_s10 = sshll.u32 %s1905_s13, 4  ;;  %s947_s10 = int_to_ptr.hbm [resolvable:$true] %s946_s10 }
  0x37   :  { %287 = vmatpush.bf16.msra.mxu0 %v1014_v10  ;;  %s944_s19 = sshll.u32 %s1596_s4, 4  ;;  %s945_s19 = int_to_ptr.vmem [resolvable:$true] %s944_s19 }
  0x38   :  { %311 = vmatpush.bf16.msra.mxu1 %v1018_v11 }
  0x39   :  { %390 = vmatpush.bf16.msra.mxu2 %v1115_v8  ;;  %465 = vmatpush.bf16.msra.mxu3 %v1115_v8 }
  0x3a   :  { %1027 = vmatmul.msk.bf16.vlgmr.msra.gmra.mxu0 %vm270_vm0, %v1740_v12 }
  0x3b   :  { %1030 = vmatmul.msk.bf16.vlgmr.msra.gmra.mxu1 %vm270_vm0, %v1740_v12 }
  0x4a   :  { %1028 = vmatmul.msk.bf16.gmra.mxu0 %vm270_vm0, %v1746_v13 }
  0x4b   :  { %1031 = vmatmul.msk.bf16.gmra.mxu1 %vm270_vm0, %v1746_v13 }
  0x5a   :  { %1029 = vmatmul.msk.bf16.gmra.mxu0 %vm270_vm0, %v1752_v14 }
  0x5b   :  { %1032 = vmatmul.msk.bf16.gmra.mxu1 %vm270_vm0, %v1752_v14 }
  0xb7   :  { %v289_v18 = vpop.f32.mrf.mxu0 }
  0xb8   :  { %v290_v19 = vadd.f32 %v289_v18, %v1758_v16  ;;  %v313_v20 = vpop.f32.mrf.mxu1  ;;  %v1118_v18 = vld [vmem:[#allocation10 + $0x8] sm:$0xff] }
  0xb9   :  { %v1761_v21 = vadd.f32 %v313_v20, %v232_v17  ;;  %579 = vmatpush.bf16.msrb.mxu2 %v1118_v18  ;;  %654 = vmatpush.bf16.msrb.mxu3 %v1118_v18 }
  0xba   :  { %1153 = vtanh.f32 %v290_v19  ;;  %v328_v38 = vmul.f32 0.5, %v290_v19  ;;  %v1117_v19 = vld [vmem:[#allocation10] sm:$0xff] }
  0xbd   :  { %580 = vmatpush.bf16.msrb.mxu2 %v1117_v19  ;;  %655 = vmatpush.bf16.msrb.mxu3 %v1117_v19 }
  0xbf   :  { %v291_v22 = vpop.f32.mrf.mxu0 }
  0xc0   :  { %v1154_v23 = vpop.eup %1153  ;;  %v292_v24 = vadd.f32 %v291_v22, %v1758_v16  ;;  %v315_v25 = vpop.f32.mrf.mxu1 }
  0xc1   :  { %v1764_v26 = vadd.f32 %v315_v25, %v232_v17  ;;  %340 = vrot.lane.b32.xlu0 %v1154_v23, %s1581_s17 }
  0xc2   :  { %1155 = vtanh.f32 %v292_v24  ;;  %v329_v39 = vmul.f32 0.5, %v292_v24 }
  0xc7   :  { %v294_v23 = vpop.f32.mrf.mxu0 }
  0xc8   :  { %v1156_v27 = vpop.eup %1155  ;;  %v318_v28 = vpop.f32.mrf.mxu1  ;;  %v295_v24 = vadd.f32 %v294_v23, %v1758_v16 }
  0xc9   :  { %v1767_v29 = vadd.f32 %v318_v28, %v232_v17  ;;  %342 = vrot.lane.b32.xlu0 %v1156_v27, %s1581_s17 }
  0xcf   :  { %v296_v28 = vpop.f32.mrf.mxu0 }
  0xd0   :  { %v320_v30 = vpop.f32.mrf.mxu1 }
  0xd1   :  { %v1770_v31 = vadd.f32 %v320_v30, %v232_v17  ;;  %v297_v30 = vadd.f32 %v296_v28, %v1758_v16 }
  0xd8   :  { %v323_v32 = vpop.f32.mrf.mxu1 }
  0xd9   :  { %v324_v33 = vadd.f32 %v323_v32, %v232_v17 }
  0xdb   :  { %1157 = vtanh.f32 %v324_v33  ;;  %v518_v51 = vmul.f32 0.5, %v324_v33 }
  0xe0   :  { %v325_v34 = vpop.f32.mrf.mxu1 }
  0xe1   :  { %v1158_v35 = vpop.eup %1157  ;;  %v326_v36 = vadd.f32 %v325_v34, %v232_v17 }
  0xe2   :  { %530 = vrot.lane.b32.xlu1 %v1158_v35, %s1581_s17 }
  0xe3   :  { %1159 = vtanh.f32 %v326_v36  ;;  %v519_v53 = vmul.f32 0.5, %v326_v36 }
  0xe4   :  { %1161 = vtanh.f32 %v328_v38 }
  0xe5   :  { %1163 = vtanh.f32 %v329_v39 }
  0xe9   :  { %v1160_v37 = vpop.eup %1159 }
  0xea   :  { %532 = vrot.lane.b32.xlu1 %v1160_v37, %s1581_s17  ;;  %v1162_v40 = vpop.eup %1161 }
  0xeb   :  { %v332_v41 = vmul.f32 0.5, %v1162_v40  ;;  %v1164_v43 = vpop.eup %1163 }
  0xec   :  { %v333_v46 = vmul.f32 0.5, %v1164_v43 }
  0xed   :  { %v334_v42 = vadd.f32 0.5, %v332_v41 }
  0xee   :  { %v335_v47 = vadd.f32 0.5, %v333_v46 }
 0x133   :  { %v341_v44 = vpop.permute.xlu0 %340 }
 0x134   :  { %v1774_v45 = vmul.f32 %v341_v44, %v334_v42 }
 0x136   :  { %1165 = vtanh.f32 %v1774_v45 }
 0x13b   :  { %v343_v48 = vpop.permute.xlu0 %342 }
 0x13c   :  { %v1166_v49 = vpop.eup %1165  ;;  %v1777_v50 = vmul.f32 %v343_v48, %v335_v47 }
 0x13d   :  { %352 = vrot.lane.b32.xlu2 %v1166_v49, %s1592_s11 }
 0x13e   :  { %1167 = vtanh.f32 %v1777_v50 }
 0x13f   :  { %1169 = vtanh.f32 %v518_v51 }
 0x140   :  { %1171 = vtanh.f32 %v519_v53 }
 0x144   :  { %v1168_v52 = vpop.eup %1167 }
 0x145   :  { %354 = vrot.lane.b32.xlu2 %v1168_v52, %s1592_s11  ;;  %v1170_v54 = vpop.eup %1169 }
 0x146   :  { %v522_v55 = vmul.f32 0.5, %v1170_v54  ;;  %v1172_v57 = vpop.eup %1171 }
 0x147   :  { %v523_v60 = vmul.f32 0.5, %v1172_v57 }
 0x148   :  { %v524_v56 = vadd.f32 0.5, %v522_v55 }
 0x149   :  { %v525_v61 = vadd.f32 0.5, %v523_v60 }
 0x154   :  { %v531_v58 = vpop.permute.xlu1 %530 }
 0x155   :  { %v1780_v59 = vmul.f32 %v531_v58, %v524_v56 }
 0x157   :  { %1173 = vtanh.f32 %v1780_v59 }
 0x15c   :  { %v533_v62 = vpop.permute.xlu1 %532 }
 0x15d   :  { %v1174_v63 = vpop.eup %1173  ;;  %v1783_v0 = vmul.f32 %v533_v62, %v525_v61 }
 0x15e   :  { %542 = vrot.lane.b32.xlu0 %v1174_v63, %s1592_s11 }
 0x15f   :  { %1175 = vtanh.f32 %v1783_v0 }
 0x165   :  { %v1176_v1 = vpop.eup %1175 }
 0x166   :  { %544 = vrot.lane.b32.xlu1 %v1176_v1, %s1592_s11 }
 0x197   :  { %v353_v2 = vpop.permute.xlu2 %352 }
 0x198   :  { %v358_v4 = vmul.f32 %v353_v2, %v334_v42 }
 0x19f   :  { %v355_v3 = vpop.permute.xlu2 %354 }
 0x1a0   :  { %v359_v5 = vmul.f32 %v355_v3, %v335_v47 }
 0x1a2   :  { %v364_v6 = vpack.c.bf16 %v359_v5, %v358_v4 }
 0x1a4   :  { %366 = vrot.lane.b32.xlu2 %v364_v6, %s1593_s18 }
 0x1d0   :  { %v543_v9 = vpop.permute.xlu0 %542 }
 0x1d1   :  { %v548_v11 = vmul.f32 %v543_v9, %v524_v56 }
 0x1d8   :  { %v545_v10 = vpop.permute.xlu1 %544 }
 0x1d9   :  { %v549_v15 = vmul.f32 %v545_v10, %v525_v61 }
 0x1db   :  { %v554_v17 = vpack.c.bf16 %v549_v15, %v548_v11 }
 0x1dd   :  { %556 = vrot.lane.b32.xlu0 %v554_v17, %s1593_s18 }
 0x1fe   :  { %v367_v20 = vpop.permute.xlu2 %366 }
 0x1ff   :  { %1041 = vmatmul.msk.bf16.vlgmr.msra.gmra.mxu2 %vm270_vm0, %v367_v20 }
 0x24f   :  { %v557_v22 = vpop.permute.xlu0 %556 }
 0x250   :  { %1051 = vmatmul.msk.bf16.vlgmr.msrb.gmra.mxu2 %vm270_vm0, %v557_v22 }
 0x282   :  { %v392_v25 = vpop.f32.mrf.mxu2 }
 0x283   :  { %v397_v27 = vadd.f32 %v392_v25, %v295_v24 }
 0x285   :  { %1177 = vtanh.f32 %v397_v27 }
 0x28a   :  { %v394_v32 = vpop.f32.mrf.mxu2 }
 0x28b   :  { %v1178_v33 = vpop.eup %1177  ;;  %v398_v34 = vadd.f32 %v394_v32, %v297_v30 }
 0x28c   :  { %421 = vrot.lane.b32.xlu1 %v1178_v33, %s1581_s17 }
 0x28d   :  { %1179 = vtanh.f32 %v398_v34  ;;  %v400_v40 = vmul.f32 0.5, %v398_v34 }
 0x293   :  { %v1180_v35 = vpop.eup %1179 }
 0x294   :  { %423 = vrot.lane.b32.xlu2 %v1180_v35, %s1581_s17 }
 0x29c   :  { %411 = vrot.lane.b32.xlu2 %v1774_v45, %s1593_s18  ;;  %v399_v45 = vmul.f32 0.5, %v397_v27 }
 0x2d3   :  { %v582_v36 = vpop.f32.mrf.mxu2 }
 0x2d4   :  { %v587_v37 = vadd.f32 %v582_v36, %v1767_v29 }
 0x2d6   :  { %1181 = vtanh.f32 %v587_v37 }
 0x2db   :  { %v584_v38 = vpop.f32.mrf.mxu2 }
 0x2dc   :  { %v1182_v39 = vpop.eup %1181  ;;  %v588_v41 = vadd.f32 %v584_v38, %v1770_v31 }
 0x2dd   :  { %611 = vrot.lane.b32.xlu0 %v1182_v39, %s1581_s17 }
 0x2de   :  { %1183 = vtanh.f32 %v588_v41  ;;  %v590_v53 = vmul.f32 0.5, %v588_v41 }
 0x2df   :  { %1185 = vtanh.f32 %v400_v40  ;;  %v299_v40 = vpop.f32.mrf.mxu0 }
 0x2e0   :  { %1187 = vtanh.f32 %v399_v45  ;;  %v300_v41 = vadd.f32 %v299_v40, %v1758_v16 }
 0x2e4   :  { %v1184_v42 = vpop.eup %1183 }
 0x2e5   :  { %413 = vrot.lane.b32.xlu0 %v1777_v50, %s1593_s18  ;;  %613 = vrot.lane.b32.xlu1 %v1184_v42, %s1581_s17  ;;  %v1186_v43 = vpop.eup %1185  ;;  %v589_v50 = vmul.f32 0.5, %v587_v37 }
 0x2e6   :  { %v404_v44 = vmul.f32 0.5, %v1186_v43  ;;  %v1188_v31 = vpop.eup %1187 }
 0x2e7   :  { %v403_v48 = vmul.f32 0.5, %v1188_v31  ;;  %1189 = vtanh.f32 %v589_v50 }
 0x2e8   :  { %v406_v29 = vadd.f32 0.5, %v404_v44  ;;  %1191 = vtanh.f32 %v590_v53  ;;  %v301_v44 = vpop.f32.mrf.mxu0 }
 0x2e9   :  { %v405_v49 = vadd.f32 0.5, %v403_v48  ;;  %v302_v45 = vadd.f32 %v301_v44, %v1758_v16  ;;  %v1123_v44 = vld [vmem:[#allocation17] sm:$0xff] }
 0x2ed   :  { %601 = vrot.lane.b32.xlu0 %v1780_v59, %s1593_s18  ;;  %v1190_v54 = vpop.eup %1189 }
 0x2ee   :  { %v424_v46 = vpop.permute.xlu2 %423  ;;  %v593_v55 = vmul.f32 0.5, %v1190_v54  ;;  %v1192_v57 = vpop.eup %1191 }
 0x2ef   :  { %v428_v47 = vmul.f32 %v424_v46, %v406_v29  ;;  %v594_v61 = vmul.f32 0.5, %v1192_v57 }
 0x2f0   :  { %v595_v56 = vadd.f32 0.5, %v593_v55 }
 0x2f1   :  { %433 = vrot.lane.b32.xlu2 %v428_v47, %s1593_s18  ;;  %v596_v62 = vadd.f32 0.5, %v594_v61 }
 0x2f6   :  { %v412_v60 = vpop.permute.xlu2 %411 }
 0x2f7   :  { %v417_v6 = vmul.f32 %v412_v60, %v405_v49 }
 0x2fe   :  { %v422_v51 = vpop.permute.xlu1 %421 }
 0x2ff   :  { %v427_v52 = vmul.f32 %v422_v51, %v405_v49 }
 0x301   :  { %431 = vrot.lane.b32.xlu1 %v427_v52, %s1593_s18 }
 0x309   :  { %603 = vrot.lane.b32.xlu1 %v1783_v0, %s1593_s18 }
 0x34b   :  { %v434_v0 = vpop.permute.xlu2 %433 }
 0x34f   :  { %v612_v58 = vpop.permute.xlu0 %611 }
 0x350   :  { %v617_v59 = vmul.f32 %v612_v58, %v595_v56 }
 0x352   :  { %621 = vrot.lane.b32.xlu2 %v617_v59, %s1593_s18 }
 0x357   :  { %v414_v63 = vpop.permute.xlu0 %413  ;;  %v614_v1 = vpop.permute.xlu1 %613 }
 0x358   :  { %v418_v2 = vmul.f32 %v414_v63, %v406_v29  ;;  %v618_v3 = vmul.f32 %v614_v1, %v596_v62 }
 0x35a   :  { %v1809_v4 = vadd.f32 %v434_v0, %v418_v2  ;;  %623 = vrot.lane.b32.xlu0 %v618_v3, %s1593_s18 }
 0x35c   :  { %1193 = vtanh.f32 %v1809_v4 }
 0x35f   :  { %v602_v10 = vpop.permute.xlu0 %601 }
 0x360   :  { %v607_v11 = vmul.f32 %v602_v10, %v595_v56 }
 0x362   :  { %v1194_v5 = vpop.eup %1193 }
 0x363   :  { %445 = vrot.lane.b32.xlu2 %v1194_v5, %s1581_s17 }
 0x373   :  { %v432_v7 = vpop.permute.xlu1 %431 }
 0x374   :  { %v1814_v8 = vadd.f32 %v432_v7, %v417_v6 }
 0x376   :  { %1195 = vtanh.f32 %v1814_v8 }
 0x37b   :  { %v604_v19 = vpop.permute.xlu1 %603 }
 0x37c   :  { %v1196_v9 = vpop.eup %1195  ;;  %v608_v20 = vmul.f32 %v604_v19, %v596_v62 }
 0x37d   :  { %443 = vrot.lane.b32.xlu1 %v1196_v9, %s1581_s17 }
 0x3ac   :  { %v622_v15 = vpop.permute.xlu2 %621 }
 0x3ad   :  { %v1818_v17 = vadd.f32 %v622_v15, %v607_v11 }
 0x3af   :  { %1197 = vtanh.f32 %v1818_v17 }
 0x3b5   :  { %v1198_v18 = vpop.eup %1197 }
 0x3b6   :  { %633 = vrot.lane.b32.xlu0 %v1198_v18, %s1581_s17 }
 0x3bd   :  { %v446_v25 = vpop.permute.xlu2 %445 }
 0x3be   :  { %v450_v28 = vmul.f32 %v446_v25, %v406_v29 }
 0x3cc   :  { %v624_v22 = vpop.permute.xlu0 %623 }
 0x3cd   :  { %v1822_v23 = vadd.f32 %v624_v22, %v608_v20 }
 0x3cf   :  { %1199 = vtanh.f32 %v1822_v23 }
 0x3d5   :  { %v1200_v24 = vpop.eup %1199 }
 0x3d6   :  { %635 = vrot.lane.b32.xlu1 %v1200_v24, %s1581_s17 }
 0x3ef   :  { %v444_v27 = vpop.permute.xlu1 %443 }
 0x3f0   :  { %v449_v30 = vmul.f32 %v444_v27, %v405_v49 }
 0x3f2   :  { %v451_v32 = vpack.c.bf16 %v450_v28, %v449_v30 }
 0x3f4   :  { %453 = vrot.lane.b32.xlu2 %v451_v32, %s1593_s18 }
 0x428   :  { %v634_v33 = vpop.permute.xlu0 %633 }
 0x429   :  { %v639_v35 = vmul.f32 %v634_v33, %v595_v56 }
 0x448   :  { %v636_v34 = vpop.permute.xlu1 %635 }
 0x449   :  { %v640_v36 = vmul.f32 %v636_v34, %v596_v62 }
 0x44b   :  { %v641_v37 = vpack.c.bf16 %v640_v36, %v639_v35 }
 0x44d   :  { %643 = vrot.lane.b32.xlu0 %v641_v37, %s1593_s18 }
 0x44e   :  { %v454_v38 = vpop.permute.xlu2 %453 }
 0x44f   :  { %1042 = vmatmul.msk.bf16.vlgmr.msra.gmra.mxu3 %vm270_vm0, %v454_v38 }
 0x4bf   :  { %v644_v39 = vpop.permute.xlu0 %643 }
 0x4c0   :  { %1052 = vmatmul.msk.bf16.vlgmr.msrb.gmra.mxu3 %vm270_vm0, %v644_v39 }
 0x4d2   :  { %v467_v42 = vpop.f32.mrf.mxu3 }
 0x4d3   :  { %v472_v43 = vadd.f32 %v467_v42, %v300_v41  ;;  %v1124_v42 = vld [vmem:[#allocation17 + $0x8] sm:$0xff] }
 0x4d4   :  { %840 = vmatpush.bf16.msrb.mxu1 %v1124_v42 }
 0x4d5   :  { %1201 = vtanh.f32 %v472_v43  ;;  %v474_v48 = vmul.f32 0.5, %v472_v43  ;;  %v1119_v43 = vld [vmem:[#allocation13] sm:$0xff] }
 0x4d8   :  { %841 = vmatpush.bf16.msrb.mxu1 %v1123_v44 }
 0x4da   :  { %v469_v29 = vpop.f32.mrf.mxu3 }
 0x4db   :  { %v1202_v46 = vpop.eup %1201  ;;  %v473_v47 = vadd.f32 %v469_v29, %v302_v45  ;;  %v1122_v45 = vld [vmem:[#allocation14 + $0x8] sm:$0xff] }
 0x4dc   :  { %488 = vrot.lane.b32.xlu1 %v1202_v46, %s1581_s17  ;;  %v1128_v29 = vld [vmem:[#allocation11 + $0x8] sm:$0xff]  ;;  %v1125_v46 = vld [vmem:[#allocation19] sm:$0xff]  ;;  %742 = vmatpush.bf16.msra.mxu2 %v1122_v45 }
 0x4dd   :  { %1203 = vtanh.f32 %v473_v47  ;;  %v475_v49 = vmul.f32 0.5, %v473_v47  ;;  %v1121_v47 = vld [vmem:[#allocation14] sm:$0xff] }
 0x4de   :  { %1205 = vtanh.f32 %v474_v48 }
 0x4df   :  { %1207 = vtanh.f32 %v475_v49 }
 0x4e0   :  { %743 = vmatpush.bf16.msra.mxu2 %v1121_v47 }
 0x4e3   :  { %v1204_v31 = vpop.eup %1203 }
 0x4e4   :  { %490 = vrot.lane.b32.xlu2 %v1204_v31, %s1581_s17  ;;  %v1206_v50 = vpop.eup %1205  ;;  %880 = vmatpush.bf16.msrb.mxu2 %v1128_v29 }
 0x4e5   :  { %v478_v53 = vmul.f32 0.5, %v1206_v50  ;;  %v1208_v16 = vpop.eup %1207 }
 0x4e6   :  { %v479_v57 = vmul.f32 0.5, %v1208_v16  ;;  %v1130_v16 = vld [vmem:[#allocation16 + $0x8] sm:$0xff] }
 0x4e7   :  { %v480_v58 = vadd.f32 0.5, %v478_v53  ;;  %v1127_v53 = vld [vmem:[#allocation11] sm:$0xff] }
 0x4e8   :  { %v481_v62 = vadd.f32 0.5, %v479_v57  ;;  %881 = vmatpush.bf16.msrb.mxu2 %v1127_v53 }
 0x4e9   :  { %v484_v1 = vmul.f32 %v480_v58, %v1814_v8 }
 0x4ea   :  { %v485_v19 = vmul.f32 %v481_v62, %v1809_v4 }
 0x53e   :  { %v491_v61 = vpop.permute.xlu2 %490 }
 0x543   :  { %v657_v51 = vpop.f32.mrf.mxu3 }
 0x544   :  { %v662_v52 = vadd.f32 %v657_v51, %v1761_v21  ;;  %v495_v21 = vmul.f32 %v491_v61, %v481_v62 }
 0x546   :  { %1209 = vtanh.f32 %v662_v52  ;;  %v664_v3 = vmul.f32 0.5, %v662_v52 }
 0x54b   :  { %v659_v54 = vpop.f32.mrf.mxu3 }
 0x54c   :  { %v1210_v55 = vpop.eup %1209  ;;  %v663_v56 = vadd.f32 %v659_v54, %v1764_v26  ;;  %v1129_v54 = vld [vmem:[#allocation16] sm:$0xff] }
 0x54d   :  { %678 = vrot.lane.b32.xlu0 %v1210_v55, %s1581_s17 }
 0x54e   :  { %1211 = vtanh.f32 %v663_v56  ;;  %v489_v59 = vpop.permute.xlu1 %488  ;;  %v665_v5 = vmul.f32 0.5, %v663_v56 }
 0x54f   :  { %v494_v60 = vmul.f32 %v489_v59, %v480_v58 }
 0x551   :  { %498 = vrot.lane.b32.xlu2 %v494_v60, %s1593_s18 }
 0x554   :  { %v1212_v63 = vpop.eup %1211 }
 0x555   :  { %680 = vrot.lane.b32.xlu1 %v1212_v63, %s1581_s17  ;;  %500 = vrot.lane.b32.xlu0 %v495_v21, %s1593_s18 }
 0x5ab   :  { %v499_v26 = vpop.permute.xlu2 %498 }
 0x5ac   :  { %v504_v2 = vadd.f32 %v499_v26, %v484_v1 }
 0x5ae   :  { %1213 = vtanh.f32 %v504_v2 }
 0x5af   :  { %1215 = vtanh.f32 %v664_v3 }
 0x5b0   :  { %1217 = vtanh.f32 %v665_v5 }
 0x5b4   :  { %v1214_v0 = vpop.eup %1213 }
 0x5b5   :  { %510 = vrot.lane.b32.xlu0 %v1214_v0, %s1581_s17  ;;  %v1216_v6 = vpop.eup %1215 }
 0x5b6   :  { %v668_v7 = vmul.f32 0.5, %v1216_v6  ;;  %v1218_v10 = vpop.eup %1217 }
 0x5b7   :  { %v669_v18 = vmul.f32 0.5, %v1218_v10 }
 0x5b8   :  { %v670_v9 = vadd.f32 0.5, %v668_v7 }
 0x5b9   :  { %v671_v8 = vadd.f32 0.5, %v669_v18 }
 0x5ba   :  { %v674_v4 = vmul.f32 %v670_v9, %v1818_v17  ;;  %v1126_v17 = vld [vmem:[#allocation19 + $0x8] sm:$0xff] }
 0x5bb   :  { %v675_v28 = vmul.f32 %v671_v8, %v1822_v23  ;;  %v1120_v23 = vld [vmem:[#allocation13 + $0x8] sm:$0xff]  ;;  %814 = vmatpush.bf16.msrb.mxu0 %v1126_v17 }
 0x5bc   :  { %774 = vmatpush.bf16.msra.mxu3 %v1120_v23 }
 0x5bf   :  { %v679_v11 = vpop.permute.xlu0 %678  ;;  %815 = vmatpush.bf16.msrb.mxu0 %v1125_v46 }
 0x5c0   :  { %v684_v15 = vmul.f32 %v679_v11, %v670_v9  ;;  %775 = vmatpush.bf16.msra.mxu3 %v1119_v43 }
 0x5c2   :  { %688 = vrot.lane.b32.xlu1 %v684_v15, %s1593_s18 }
 0x5c3   :  { %928 = vmatpush.bf16.msra.mxu0 %v1130_v16 }
 0x5c4   :  { %898 = vmatpush.bf16.msrb.mxu3 %v1128_v29 }
 0x5c7   :  { %v681_v20 = vpop.permute.xlu1 %680  ;;  %v501_v22 = vpop.permute.xlu0 %500  ;;  %929 = vmatpush.bf16.msra.mxu0 %v1129_v54 }
 0x5c8   :  { %v685_v24 = vmul.f32 %v681_v20, %v671_v8  ;;  %v505_v25 = vadd.f32 %v501_v22, %v485_v19  ;;  %899 = vmatpush.bf16.msrb.mxu3 %v1127_v53 }
 0x5ca   :  { %1219 = vtanh.f32 %v505_v25  ;;  %690 = vrot.lane.b32.xlu2 %v685_v24, %s1593_s18 }
 0x5d0   :  { %v1220_v27 = vpop.eup %1219 }
 0x5d1   :  { %512 = vrot.lane.b32.xlu1 %v1220_v27, %s1581_s17 }
 0x624   :  { %v691_v30 = vpop.permute.xlu2 %690 }
 0x625   :  { %v695_v32 = vadd.f32 %v691_v30, %v675_v28 }
 0x627   :  { %1221 = vtanh.f32 %v695_v32  ;;  %v511_v37 = vpop.permute.xlu0 %510 }
 0x628   :  { %v516_v39 = vmul.f32 %v511_v37, %v480_v58 }
 0x62d   :  { %v1222_v33 = vpop.eup %1221 }
 0x62e   :  { %702 = vrot.lane.b32.xlu0 %v1222_v33, %s1581_s17 }
 0x634   :  { %v689_v34 = vpop.permute.xlu1 %688 }
 0x635   :  { %v694_v35 = vadd.f32 %v689_v34, %v674_v4 }
 0x637   :  { %1223 = vtanh.f32 %v694_v35 }
 0x63d   :  { %v1224_v36 = vpop.eup %1223 }
 0x63e   :  { %700 = vrot.lane.b32.xlu2 %v1224_v36, %s1581_s17 }
 0x643   :  { %v513_v38 = vpop.permute.xlu1 %512 }
 0x644   :  { %v517_v40 = vmul.f32 %v513_v38, %v481_v62 }
 0x646   :  { %v708_v41 = vpack.c.bf16 %v517_v40, %v516_v39 }
 0x648   :  { %751 = vrot.lane.b32.xlu2 %v708_v41, %s1593_s18 }
 0x698   :  { %v701_v31 = vpop.permute.xlu2 %700 }
 0x699   :  { %v706_v49 = vmul.f32 %v701_v31, %v670_v9 }
 0x6a0   :  { %v703_v48 = vpop.permute.xlu0 %702 }
 0x6a1   :  { %v707_v51 = vmul.f32 %v703_v48, %v671_v8 }
 0x6a2   :  { %v752_v52 = vpop.permute.xlu2 %751 }
 0x6a3   :  { %v709_v50 = vpack.c.bf16 %v707_v51, %v706_v49  ;;  %1070 = vmatmul.msk.bf16.vlgmr.msra.gmra.mxu3 %vm270_vm0, %v752_v52  ;;  %1088 = vmatmul.msk.bf16.vlgmr.msrb.gmra.mxu1 %vm270_vm0, %v752_v52 }
 0x6a5   :  { %719 = vrot.lane.b32.xlu1 %v709_v50, %s1593_s18 }
 0x6b3   :  { %1098 = vmatmul.msk.bf16.vlgmr.msrb.gmra.mxu3 %vm270_vm0, %v1752_v14  ;;  %v1151_v14 = vld [vmem:[%s1900_s8] ss:$0 sm:$0xff]  ;;  %s1594_s8 = smov [#allocation21]  }
 0x717   :  { %v720_v55 = vpop.permute.xlu1 %719 }
 0x718   :  { %1061 = vmatmul.msk.bf16.vlgmr.msra.gmra.mxu2 %vm270_vm0, %v720_v55  ;;  %1079 = vmatmul.msk.bf16.vlgmr.msrb.gmra.mxu0 %vm270_vm0, %v720_v55 }
 0x720   :  { %v843_v62 = vpop.f32.mrf.mxu1 }
 0x726   :  { %v777_v56 = vpop.f32.mrf.mxu3 }
 0x728   :  { %1097 = vmatmul.msk.bf16.vlgmr.msrb.gmra.mxu2 %vm270_vm0, %v1740_v12  ;;  %1107 = vmatmul.msk.bf16.vlgmr.msra.gmra.mxu0 %vm270_vm0, %v1746_v13  ;;  %v1152_v12 = vld [vmem:[%s1904_s12] ss:$0 sm:$0xff]  ;;  %v845_v10 = vpop.f32.mrf.mxu1  ;;  %s957_s12 = sshll.u32 %s1594_s8, 4  ;;  %s958_s12 = int_to_ptr.vmem [resolvable:$true] %s957_s12 }
 0x72e   :  { %v779_v57 = vpop.f32.mrf.mxu3 }
 0x736   :  { %v901_v60 = vpop.f32.mrf.mxu3 }
 0x73e   :  { %v903_v6 = vpop.f32.mrf.mxu3 }
 0x795   :  { %v817_v58 = vpop.f32.mrf.mxu0 }
 0x796   :  { %v844_v1 = vadd.f32 %v843_v62, %v817_v58 }
 0x798   :  { %v852_v0 = vadd.f32 %v1152_v12, %v844_v1 }
 0x79b   :  { %v745_v59 = vpop.f32.mrf.mxu2 }
 0x79c   :  { %v778_v61 = vadd.f32 %v777_v56, %v745_v59 }
 0x79d   :  { %v819_v21 = vpop.f32.mrf.mxu0 }
 0x79e   :  { %v786_v63 = vadd.f32 %v1151_v14, %v778_v61  ;;  %v846_v11 = vadd.f32 %v845_v10, %v819_v21 }
 0x7a0   :  { %v902_v26 = vadd.f32 %v901_v60, %v786_v63  ;;  %v853_v22 = vadd.f32 %v1152_v12, %v846_v11 }
 0x7a2   :  { %v906_v13 = vmax.f32 %v902_v26, 0.0 }
 0x7a3   :  { %v747_v2 = vpop.f32.mrf.mxu2 }
 0x7a4   :  { %908 = vst.msk [vmem:[#allocation23] sm:$0xff] %vm270_vm0, %v906_v13  ;;  %v780_v3 = vadd.f32 %v779_v57, %v747_v2 }
 0x7a5   :  { %v931_v5 = vpop.f32.mrf.mxu0 }
 0x7a6   :  { %v932_v7 = vadd.f32 %v931_v5, %v852_v0  ;;  %v787_v9 = vadd.f32 %v1151_v14, %v780_v3 }
 0x7a8   :  { %v936_v15 = vmax.f32 %v932_v7, 0.0  ;;  %v904_v18 = vadd.f32 %v903_v6, %v787_v9 }
 0x7aa   :  { %938 = vst.msk [vmem:[#allocation21] sm:$0xff] %vm270_vm0, %v936_v15  ;;  %v907_v8 = vmax.f32 %v904_v18, 0.0 }
 0x7ab   :  { %v883_v19 = vpop.f32.mrf.mxu2 }
 0x7ac   :  { %909 = vst.msk [vmem:[#allocation23 + $0x8] sm:$0xff] %vm270_vm0, %v907_v8  ;;  %v884_v20 = vadd.f32 %v883_v19, %v786_v63 }
 0x7ad   :  { %v933_v24 = vpop.f32.mrf.mxu0 }
 0x7ae   :  { %v888_v25 = vmax.f32 %v884_v20, 0.0  ;;  %v934_v27 = vadd.f32 %v933_v24, %v853_v22 }
 0x7b0   :  { %890 = vst.msk [vmem:[#allocation20] sm:$0xff] %vm270_vm0, %v888_v25  ;;  %v937_v28 = vmax.f32 %v934_v27, 0.0 }
 0x7b2   :  { %939 = vst.msk [vmem:[#allocation21 + $0x8] sm:$0xff] %vm270_vm0, %v937_v28 }
 0x7b3   :  { %v885_v30 = vpop.f32.mrf.mxu2  ;;  %965 = dma.vmem_to_hbm [thread:$0]  %s958_s12, 256, %s960_s30, [#allocation22], %s1578_s23, %s1578_s23, %s1579_s24  }
 0x7b4   :  { %v886_v32 = vadd.f32 %v885_v30, %v787_v9  ;;  %978 = dma.vmem_to_hbm [thread:$0]  %s971_s27, 256, %s973_s1, [#allocation22], %s1578_s23, %s1578_s23, %s1579_s24  }
 0x7b6   :  { %v889_v33 = vmax.f32 %v886_v32, 0.0 }
 0x7b8   :  { %891 = vst.msk [vmem:[#allocation20 + $0x8] sm:$0xff] %vm270_vm0, %v889_v33 }
 0x7b9   :  { %952 = dma.vmem_to_hbm [thread:$0]  %s945_s19, 256, %s947_s10, [#allocation4], %s1578_s23, %s1578_s23, %s1579_s24  }
 0x7ba   :  { %1573 = dma.done.wait [#allocation4], 256  }
 0x7bb   :  { %1574 = vsyncadd [#allocation4], 4294967040 }
 0x7bc   :  { %1575 = dma.done.wait [#allocation22], 512  }
 0x7bd   :  { %1576 = vsyncadd [#allocation22], 4294966784 }
 0x7be   :  { %991 = vsyncpa [#allocation3], 1 }
 0x7bf   :  { %992 = vsyncpa [#allocation6], 1 }
 0x7c0   :  { %993 = vsyncpa [#allocation9], 1 }
 0x7c1   :  { %994 = vsyncpa [#allocation12], 1 }
 0x7c2   :  { %995 = vsyncpa [#allocation15], 1 }
 0x7c3   :  { %996 = vsyncpa [#allocation18], 1 }
 0x7c4   :  { %997 = vsyncpa [#allocation4], 1 }
 0x7c5   :  { %998 = vsyncpa [#allocation22], 1 }

// kernel: tpu_custom_call.1
= control target key start
LH: loop header
LB: loop body
LE: loop exit
PB: predicated region body
PF: predicated region fallthrough
CT: control target
= control target key end

     0   :  { %21 = vsyncpa [#allocation3], 0  ;;  %s1892_s0 = inlined_call_operand.hbm [shape: bf16[3,16,32], index: 0, kind: input, shape index: {}]   ;;  %s1893_s1 = inlined_call_operand.hbm [shape: bf16[32,256], index: 1, kind: input, shape index: {}]   ;;  %s1894_s2 = inlined_call_operand.hbm [shape: f32[1,256], index: 2, kind: input, shape index: {}]   ;;  %s1895_s3 = inlined_call_operand.hbm [shape: bf16[32,128], index: 3, kind: input, shape index: {}]   ;;  %s1896_s4 = inlined_call_operand.hbm [shape: bf16[32,128], index: 4, kind: input, shape index: {}]   ;;  %s1897_s5 = inlined_call_operand.hbm [shape: bf16[32,32], index: 5, kind: input, shape index: {}]   ;;  %s1898_s6 = inlined_call_operand.hbm [shape: bf16[32,32], index: 6, kind: input, shape index: {}]   ;;  %s1899_s7 = inlined_call_operand.hbm [shape: bf16[32,32], index: 7, kind: input, shape index: {}]   ;;  %s1900_s8 = inlined_call_operand.vmem [shape: f32[1,32], index: 8, kind: input, shape index: {}]   ;;  %s1901_s9 = inlined_call_operand.hbm [shape: bf16[32,32], index: 9, kind: input, shape index: {}]   ;;  %s1902_s10 = inlined_call_operand.hbm [shape: bf16[32,32], index: 10, kind: input, shape index: {}]   ;;  %s1903_s11 = inlined_call_operand.hbm [shape: bf16[32,32], index: 11, kind: input, shape index: {}]   ;;  %s1904_s12 = inlined_call_operand.vmem [shape: f32[1,32], index: 12, kind: input, shape index: {}]   ;;  %s1905_s13 = inlined_call_operand.hbm [shape: f32[16,32], index: 13, kind: output, shape index: {0}]   ;;  %s1906_s14 = inlined_call_operand.hbm [shape: f32[16,32], index: 14, kind: output, shape index: {1}]   ;;  %s1907_s15 = inlined_call_operand.hbm [shape: f32[16,32], index: 15, kind: output, shape index: {2}]  }
   0x1   :  { %22 = vsyncpa [#allocation6], 0 }
   0x2   :  { %23 = vsyncpa [#allocation9], 0 }
   0x3   :  { %24 = vsyncpa [#allocation12], 0 }
   0x4   :  { %25 = vsyncpa [#allocation15], 0 }
   0x5   :  { %26 = vsyncpa [#allocation18], 0 }
   0x6   :  { %27 = vsyncpa [#allocation4], 0  ;;  %s46_s20 = sshll.u32 %s1893_s1, 4  ;;  %s47_s20 = int_to_ptr.hbm [resolvable:$true] %s46_s20 }
   0x7   :  { %28 = vsyncpa [#allocation22], 0  ;;  %s1577_s21 = smov [#allocation5]   ;;  %s1578_s23 = smov 128  }
   0x8   :  { %s48_s22 = sshll.u32 %s1577_s21, 4  ;;  %s1579_s24 = smov 8   ;;  %s49_s22 = int_to_ptr.vmem [resolvable:$true] %s48_s22 }
   0x9   :  { %54 = dma.hbm_to_vmem [thread:$0]  %s47_s20, 512, %s49_s22, [#allocation6], %s1578_s23, %s1578_s23, %s1579_s24  }
   0xa   :  { %s70_s27 = sshll.u32 %s1895_s3, 4  ;;  %s1580_s28 = smov [#allocation8]   ;;  %s71_s27 = int_to_ptr.hbm [resolvable:$true] %s70_s27 }
   0xb   :  { %s72_s29 = sshll.u32 %s1580_s28, 4  ;;  %s96_s16 = sshll.u32 %s1897_s5, 4  ;;  %s73_s29 = int_to_ptr.vmem [resolvable:$true] %s72_s29  ;;  %s97_s16 = int_to_ptr.hbm [resolvable:$true] %s96_s16 }
   0xc   :  { %s1581_s17 = smov 64   ;;  %s1582_s18 = smov 4  }
   0xd   :  { %78 = dma.hbm_to_vmem [thread:$0]  %s71_s27, 256, %s73_s29, [#allocation9], %s1581_s17, %s1581_s17, %s1582_s18  }
   0xe   :  { %s122_s21 = sshll.u32 %s1899_s7, 4  ;;  %s1583_s3 = smov [#allocation11]   ;;  %s123_s21 = int_to_ptr.hbm [resolvable:$true] %s122_s21 }
   0xf   :  { %s98_s22 = sshll.u32 %s1583_s3, 4  ;;  %s1584_s5 = smov [#allocation14]   ;;  %s99_s22 = int_to_ptr.vmem [resolvable:$true] %s98_s22 }
  0x10   :  { %104 = dma.hbm_to_vmem [thread:$0]  %s97_s16, 256, %s99_s22, [#allocation12], %s1581_s17, %s1581_s17, %s1582_s18  }
  0x11   :  { %s124_s25 = sshll.u32 %s1584_s5, 4  ;;  %s150_s30 = sshll.u32 %s1902_s10, 4  ;;  %s125_s25 = int_to_ptr.vmem [resolvable:$true] %s124_s25  ;;  %s151_s30 = int_to_ptr.hbm [resolvable:$true] %s150_s30 }
  0x12   :  { %130 = dma.hbm_to_vmem [thread:$0]  %s123_s21, 256, %s125_s25, [#allocation15], %s1581_s17, %s1581_s17, %s1582_s18  }
  0x13   :  { %s33_s29 = sshll.u32 %s1892_s0, 4  ;;  %s1585_s1 = smov [#allocation17]   ;;  %s34_s29 = int_to_ptr.hbm [resolvable:$true] %s33_s29 }
  0x14   :  { %s152_s19 = sshll.u32 %s1585_s1, 4  ;;  %s1586_s16 = smov [#allocation2]   ;;  %s153_s19 = int_to_ptr.vmem [resolvable:$true] %s152_s19 }
  0x15   :  { %158 = dma.hbm_to_vmem [thread:$0]  %s151_s30, 256, %s153_s19, [#allocation18], %s1581_s17, %s1581_s17, %s1582_s18  }
  0x16   :  { %s35_s10 = sshll.u32 %s1586_s16, 4  ;;  %s60_s22 = sshll.u32 %s1894_s2, 4  ;;  %s36_s10 = int_to_ptr.vmem [resolvable:$true] %s35_s10  ;;  %s61_s22 = int_to_ptr.hbm [resolvable:$true] %s60_s22 }
  0x17   :  { %41 = dma.hbm_to_vmem [thread:$0]  %s34_s29, 384, %s36_s10, [#allocation3], %s1581_s17, %s1581_s17, %s1582_s18  }
  0x18   :  { %s83_s5 = sshll.u32 %s1896_s4, 4  ;;  %s1587_s25 = smov [#allocation7]   ;;  %s84_s5 = int_to_ptr.hbm [resolvable:$true] %s83_s5 }
  0x19   :  { %s62_s26 = sshll.u32 %s1587_s25, 4  ;;  %s1588_s28 = smov [#allocation10]   ;;  %s63_s26 = int_to_ptr.vmem [resolvable:$true] %s62_s26 }
  0x1a   :  { %65 = dma.hbm_to_vmem [thread:$0]  %s61_s22, 32, %s63_s26, [#allocation6]  }
  0x1b   :  { %s85_s30 = sshll.u32 %s1588_s28, 4  ;;  %s109_s2 = sshll.u32 %s1898_s6, 4  ;;  %s86_s30 = int_to_ptr.vmem [resolvable:$true] %s85_s30  ;;  %s110_s2 = int_to_ptr.hbm [resolvable:$true] %s109_s2 }
  0x1c   :  { %91 = dma.hbm_to_vmem [thread:$0]  %s84_s5, 256, %s86_s30, [#allocation9], %s1581_s17, %s1581_s17, %s1582_s18  }
  0x1d   :  { %s137_s4 = sshll.u32 %s1901_s9, 4  ;;  %s1589_s19 = smov [#allocation13]   ;;  %s138_s4 = int_to_ptr.hbm [resolvable:$true] %s137_s4 }
  0x1e   :  { %s111_s16 = sshll.u32 %s1589_s19, 4  ;;  %s1590_s10 = smov [#allocation16]   ;;  %s112_s16 = int_to_ptr.vmem [resolvable:$true] %s111_s16 }
  0x1f   :  { %117 = dma.hbm_to_vmem [thread:$0]  %s110_s2, 256, %s112_s16, [#allocation12], %s1581_s17, %s1581_s17, %s1582_s18  }
  0x20   :  { %s139_s6 = sshll.u32 %s1590_s10, 4  ;;  %s163_s22 = sshll.u32 %s1903_s11, 4  ;;  %s140_s6 = int_to_ptr.vmem [resolvable:$true] %s139_s6  ;;  %s164_s22 = int_to_ptr.hbm [resolvable:$true] %s163_s22 }
  0x21   :  { %145 = dma.hbm_to_vmem [thread:$0]  %s138_s4, 256, %s140_s6, [#allocation15], %s1581_s17, %s1581_s17, %s1582_s18  }
  0x22   :  { %s1591_s9 = smov [#allocation19]  }
  0x23   :  { %s165_s0 = sshll.u32 %s1591_s9, 4  ;;  %s166_s0 = int_to_ptr.vmem [resolvable:$true] %s165_s0 }
  0x24   :  { %171 = dma.hbm_to_vmem [thread:$0]  %s164_s22, 256, %s166_s0, [#allocation18], %s1581_s17, %s1581_s17, %s1582_s18  }
  0x25   :  { %1561 = dma.done.wait [#allocation3], 384  }
  0x26   :  { %1562 = vsyncadd [#allocation3], 4294966912 }
  0x27   :  { %1563 = dma.done.wait [#allocation6], 544  }
  0x28   :  { %1564 = vsyncadd [#allocation6], 4294966752 }
  0x29   :  { %1565 = dma.done.wait [#allocation9], 512  }
  0x2a   :  { %1566 = vsyncadd [#allocation9], 4294966784 }
  0x2b   :  { %1567 = dma.done.wait [#allocation12], 512  }
  0x2c   :  { %1568 = vsyncadd [#allocation12], 4294966784 }
  0x2d   :  { %1569 = dma.done.wait [#allocation15], 512  }
  0x2e   :  { %1570 = vsyncadd [#allocation15], 4294966784 }
  0x2f   :  { %1571 = dma.done.wait [#allocation18], 512  }
  0x30   :  { %1572 = vsyncadd [#allocation18], 4294966784  ;;  %v1021_v0 = vld [vmem:[#allocation5 + $0x10] sm:$0xf]  ;;  %v1114_v1 = vld [vmem:[#allocation5 + $0x14] sm:$0xf0] }
  0x31   :  { %v1113_v2 = vld [vmem:[#allocation5 + $0x14] sm:$0xf]  ;;  %v1022_v3 = vor.u32 %v1114_v1, %v1021_v0  ;;  %v1023_v4 = vld [vmem:[#allocation5 + $0x18] sm:$0xf0]  ;;  %v1013_v5 = vld [vmem:[#allocation5] sm:$0xf] }
  0x32   :  { %v1112_v6 = vld [vmem:[#allocation5 + $0x4] sm:$0xf0]  ;;  %v1026_v7 = vor.u32 %v1113_v2, %v1023_v4  ;;  %v1111_v8 = vld [vmem:[#allocation5 + $0x4] sm:$0xf]  ;;  %v1015_v9 = vld [vmem:[#allocation5 + $0x8] sm:$0xf0] }
  0x33   :  { %286 = vmatpush.bf16.msra.mxu0 %v1022_v3  ;;  %v1014_v10 = vor.u32 %v1112_v6, %v1013_v5  ;;  %v1018_v11 = vor.u32 %v1111_v8, %v1015_v9  ;;  %v1740_v12 = vld [vmem:[#allocation2] sm:$0xff]  ;;  %vm270_vm0 = vcmask 261120   ;;  %v1746_v13 = vld [vmem:[#allocation2 + $0x8] sm:$0xff]  ;;  %v1752_v14 = vld [vmem:[#allocation2 + $0x10] sm:$0xff]  ;;  %s1592_s11 = smov 96   ;;  %s1593_s18 = smov 32  }
  0x34   :  { %310 = vmatpush.bf16.msra.mxu1 %v1026_v7  ;;  %v229_v15 = vld [vmem:[#allocation7] sm:$0x3]  ;;  %v1116_v7 = vld [vmem:[#allocation8 + $0x8] sm:$0xff]  ;;  %v1115_v8 = vld [vmem:[#allocation8] sm:$0xff]  ;;  %s959_s30 = sshll.u32 %s1906_s14, 4  ;;  %s1595_s7 = smov [#allocation23]   ;;  %s960_s30 = int_to_ptr.hbm [resolvable:$true] %s959_s30 }
  0x35   :  { %v1758_v16 = vperm.slane %v229_v15, 0  ;;  %v232_v17 = vperm.slane %v229_v15, 1  ;;  %389 = vmatpush.bf16.msra.mxu2 %v1116_v7  ;;  %464 = vmatpush.bf16.msra.mxu3 %v1116_v7  ;;  %s970_s27 = sshll.u32 %s1595_s7, 4  ;;  %s972_s1 = sshll.u32 %s1907_s15, 4  ;;  %s971_s27 = int_to_ptr.vmem [resolvable:$true] %s970_s27  ;;  %s973_s1 = int_to_ptr.hbm [resolvable:$true] %s972_s1 }
  0x36   :  { %s1596_s4 = smov [#allocation20]   ;;  %s946_s10 = sshll.u32 %s1905_s13, 4  ;;  %s947_s10 = int_to_ptr.hbm [resolvable:$true] %s946_s10 }
  0x37   :  { %287 = vmatpush.bf16.msra.mxu0 %v1014_v10  ;;  %s944_s19 = sshll.u32 %s1596_s4, 4  ;;  %s945_s19 = int_to_ptr.vmem [resolvable:$true] %s944_s19 }
  0x38   :  { %311 = vmatpush.bf16.msra.mxu1 %v1018_v11 }
  0x39   :  { %390 = vmatpush.bf16.msra.mxu2 %v1115_v8  ;;  %465 = vmatpush.bf16.msra.mxu3 %v1115_v8 }
  0x3a   :  { %1027 = vmatmul.msk.bf16.vlgmr.msra.gmra.mxu0 %vm270_vm0, %v1740_v12 }
  0x3b   :  { %1030 = vmatmul.msk.bf16.vlgmr.msra.gmra.mxu1 %vm270_vm0, %v1740_v12 }
  0x4a   :  { %1028 = vmatmul.msk.bf16.gmra.mxu0 %vm270_vm0, %v1746_v13 }
  0x4b   :  { %1031 = vmatmul.msk.bf16.gmra.mxu1 %vm270_vm0, %v1746_v13 }
  0x5a   :  { %1029 = vmatmul.msk.bf16.gmra.mxu0 %vm270_vm0, %v1752_v14 }
  0x5b   :  { %1032 = vmatmul.msk.bf16.gmra.mxu1 %vm270_vm0, %v1752_v14 }
  0xb7   :  { %v289_v18 = vpop.f32.mrf.mxu0 }
  0xb8   :  { %v290_v19 = vadd.f32 %v289_v18, %v1758_v16  ;;  %v313_v20 = vpop.f32.mrf.mxu1  ;;  %v1118_v18 = vld [vmem:[#allocation10 + $0x8] sm:$0xff] }
  0xb9   :  { %v1761_v21 = vadd.f32 %v313_v20, %v232_v17  ;;  %579 = vmatpush.bf16.msrb.mxu2 %v1118_v18  ;;  %654 = vmatpush.bf16.msrb.mxu3 %v1118_v18 }
  0xba   :  { %1153 = vtanh.f32 %v290_v19  ;;  %v328_v38 = vmul.f32 0.5, %v290_v19  ;;  %v1117_v19 = vld [vmem:[#allocation10] sm:$0xff] }
  0xbd   :  { %580 = vmatpush.bf16.msrb.mxu2 %v1117_v19  ;;  %655 = vmatpush.bf16.msrb.mxu3 %v1117_v19 }
  0xbf   :  { %v291_v22 = vpop.f32.mrf.mxu0 }
  0xc0   :  { %v1154_v23 = vpop.eup %1153  ;;  %v292_v24 = vadd.f32 %v291_v22, %v1758_v16  ;;  %v315_v25 = vpop.f32.mrf.mxu1 }
  0xc1   :  { %v1764_v26 = vadd.f32 %v315_v25, %v232_v17  ;;  %340 = vrot.lane.b32.xlu0 %v1154_v23, %s1581_s17 }
  0xc2   :  { %1155 = vtanh.f32 %v292_v24  ;;  %v329_v39 = vmul.f32 0.5, %v292_v24 }
  0xc7   :  { %v294_v23 = vpop.f32.mrf.mxu0 }
  0xc8   :  { %v1156_v27 = vpop.eup %1155  ;;  %v318_v28 = vpop.f32.mrf.mxu1  ;;  %v295_v24 = vadd.f32 %v294_v23, %v1758_v16 }
  0xc9   :  { %v1767_v29 = vadd.f32 %v318_v28, %v232_v17  ;;  %342 = vrot.lane.b32.xlu0 %v1156_v27, %s1581_s17 }
  0xcf   :  { %v296_v28 = vpop.f32.mrf.mxu0 }
  0xd0   :  { %v320_v30 = vpop.f32.mrf.mxu1 }
  0xd1   :  { %v1770_v31 = vadd.f32 %v320_v30, %v232_v17  ;;  %v297_v30 = vadd.f32 %v296_v28, %v1758_v16 }
  0xd8   :  { %v323_v32 = vpop.f32.mrf.mxu1 }
  0xd9   :  { %v324_v33 = vadd.f32 %v323_v32, %v232_v17 }
  0xdb   :  { %1157 = vtanh.f32 %v324_v33  ;;  %v518_v51 = vmul.f32 0.5, %v324_v33 }
  0xe0   :  { %v325_v34 = vpop.f32.mrf.mxu1 }
  0xe1   :  { %v1158_v35 = vpop.eup %1157  ;;  %v326_v36 = vadd.f32 %v325_v34, %v232_v17 }
  0xe2   :  { %530 = vrot.lane.b32.xlu1 %v1158_v35, %s1581_s17 }
  0xe3   :  { %1159 = vtanh.f32 %v326_v36  ;;  %v519_v53 = vmul.f32 0.5, %v326_v36 }
  0xe4   :  { %1161 = vtanh.f32 %v328_v38 }
  0xe5   :  { %1163 = vtanh.f32 %v329_v39 }
  0xe9   :  { %v1160_v37 = vpop.eup %1159 }
  0xea   :  { %532 = vrot.lane.b32.xlu1 %v1160_v37, %s1581_s17  ;;  %v1162_v40 = vpop.eup %1161 }
  0xeb   :  { %v332_v41 = vmul.f32 0.5, %v1162_v40  ;;  %v1164_v43 = vpop.eup %1163 }
  0xec   :  { %v333_v46 = vmul.f32 0.5, %v1164_v43 }
  0xed   :  { %v334_v42 = vadd.f32 0.5, %v332_v41 }
  0xee   :  { %v335_v47 = vadd.f32 0.5, %v333_v46 }
 0x133   :  { %v341_v44 = vpop.permute.xlu0 %340 }
 0x134   :  { %v1774_v45 = vmul.f32 %v341_v44, %v334_v42 }
 0x136   :  { %1165 = vtanh.f32 %v1774_v45 }
 0x13b   :  { %v343_v48 = vpop.permute.xlu0 %342 }
 0x13c   :  { %v1166_v49 = vpop.eup %1165  ;;  %v1777_v50 = vmul.f32 %v343_v48, %v335_v47 }
 0x13d   :  { %352 = vrot.lane.b32.xlu2 %v1166_v49, %s1592_s11 }
 0x13e   :  { %1167 = vtanh.f32 %v1777_v50 }
 0x13f   :  { %1169 = vtanh.f32 %v518_v51 }
 0x140   :  { %1171 = vtanh.f32 %v519_v53 }
 0x144   :  { %v1168_v52 = vpop.eup %1167 }
 0x145   :  { %354 = vrot.lane.b32.xlu2 %v1168_v52, %s1592_s11  ;;  %v1170_v54 = vpop.eup %1169 }
 0x146   :  { %v522_v55 = vmul.f32 0.5, %v1170_v54  ;;  %v1172_v57 = vpop.eup %1171 }
 0x147   :  { %v523_v60 = vmul.f32 0.5, %v1172_v57 }
 0x148   :  { %v524_v56 = vadd.f32 0.5, %v522_v55 }
 0x149   :  { %v525_v61 = vadd.f32 0.5, %v523_v60 }
 0x154   :  { %v531_v58 = vpop.permute.xlu1 %530 }
 0x155   :  { %v1780_v59 = vmul.f32 %v531_v58, %v524_v56 }
 0x157   :  { %1173 = vtanh.f32 %v1780_v59 }
 0x15c   :  { %v533_v62 = vpop.permute.xlu1 %532 }
 0x15d   :  { %v1174_v63 = vpop.eup %1173  ;;  %v1783_v0 = vmul.f32 %v533_v62, %v525_v61 }
 0x15e   :  { %542 = vrot.lane.b32.xlu0 %v1174_v63, %s1592_s11 }
 0x15f   :  { %1175 = vtanh.f32 %v1783_v0 }
 0x165   :  { %v1176_v1 = vpop.eup %1175 }
 0x166   :  { %544 = vrot.lane.b32.xlu1 %v1176_v1, %s1592_s11 }
 0x197   :  { %v353_v2 = vpop.permute.xlu2 %352 }
 0x198   :  { %v358_v4 = vmul.f32 %v353_v2, %v334_v42 }
 0x19f   :  { %v355_v3 = vpop.permute.xlu2 %354 }
 0x1a0   :  { %v359_v5 = vmul.f32 %v355_v3, %v335_v47 }
 0x1a2   :  { %v364_v6 = vpack.c.bf16 %v359_v5, %v358_v4 }
 0x1a4   :  { %366 = vrot.lane.b32.xlu2 %v364_v6, %s1593_s18 }
 0x1d0   :  { %v543_v9 = vpop.permute.xlu0 %542 }
 0x1d1   :  { %v548_v11 = vmul.f32 %v543_v9, %v524_v56 }
 0x1d8   :  { %v545_v10 = vpop.permute.xlu1 %544 }
 0x1d9   :  { %v549_v15 = vmul.f32 %v545_v10, %v525_v61 }
 0x1db   :  { %v554_v17 = vpack.c.bf16 %v549_v15, %v548_v11 }
 0x1dd   :  { %556 = vrot.lane.b32.xlu0 %v554_v17, %s1593_s18 }
 0x1fe   :  { %v367_v20 = vpop.permute.xlu2 %366 }
 0x1ff   :  { %1041 = vmatmul.msk.bf16.vlgmr.msra.gmra.mxu2 %vm270_vm0, %v367_v20 }
 0x24f   :  { %v557_v22 = vpop.permute.xlu0 %556 }
 0x250   :  { %1051 = vmatmul.msk.bf16.vlgmr.msrb.gmra.mxu2 %vm270_vm0, %v557_v22 }
 0x282   :  { %v392_v25 = vpop.f32.mrf.mxu2 }
 0x283   :  { %v397_v27 = vadd.f32 %v392_v25, %v295_v24 }
 0x285   :  { %1177 = vtanh.f32 %v397_v27 }
 0x28a   :  { %v394_v32 = vpop.f32.mrf.mxu2 }
 0x28b   :  { %v1178_v33 = vpop.eup %1177  ;;  %v398_v34 = vadd.f32 %v394_v32, %v297_v30 }
 0x28c   :  { %421 = vrot.lane.b32.xlu1 %v1178_v33, %s1581_s17 }
 0x28d   :  { %1179 = vtanh.f32 %v398_v34  ;;  %v400_v40 = vmul.f32 0.5, %v398_v34 }
 0x293   :  { %v1180_v35 = vpop.eup %1179 }
 0x294   :  { %423 = vrot.lane.b32.xlu2 %v1180_v35, %s1581_s17 }
 0x29c   :  { %411 = vrot.lane.b32.xlu2 %v1774_v45, %s1593_s18  ;;  %v399_v45 = vmul.f32 0.5, %v397_v27 }
 0x2d3   :  { %v582_v36 = vpop.f32.mrf.mxu2 }
 0x2d4   :  { %v587_v37 = vadd.f32 %v582_v36, %v1767_v29 }
 0x2d6   :  { %1181 = vtanh.f32 %v587_v37 }
 0x2db   :  { %v584_v38 = vpop.f32.mrf.mxu2 }
 0x2dc   :  { %v1182_v39 = vpop.eup %1181  ;;  %v588_v41 = vadd.f32 %v584_v38, %v1770_v31 }
 0x2dd   :  { %611 = vrot.lane.b32.xlu0 %v1182_v39, %s1581_s17 }
 0x2de   :  { %1183 = vtanh.f32 %v588_v41  ;;  %v590_v53 = vmul.f32 0.5, %v588_v41 }
 0x2df   :  { %1185 = vtanh.f32 %v400_v40  ;;  %v299_v40 = vpop.f32.mrf.mxu0 }
 0x2e0   :  { %1187 = vtanh.f32 %v399_v45  ;;  %v300_v41 = vadd.f32 %v299_v40, %v1758_v16 }
 0x2e4   :  { %v1184_v42 = vpop.eup %1183 }
 0x2e5   :  { %413 = vrot.lane.b32.xlu0 %v1777_v50, %s1593_s18  ;;  %613 = vrot.lane.b32.xlu1 %v1184_v42, %s1581_s17  ;;  %v1186_v43 = vpop.eup %1185  ;;  %v589_v50 = vmul.f32 0.5, %v587_v37 }
 0x2e6   :  { %v404_v44 = vmul.f32 0.5, %v1186_v43  ;;  %v1188_v31 = vpop.eup %1187 }
 0x2e7   :  { %v403_v48 = vmul.f32 0.5, %v1188_v31  ;;  %1189 = vtanh.f32 %v589_v50 }
 0x2e8   :  { %v406_v29 = vadd.f32 0.5, %v404_v44  ;;  %1191 = vtanh.f32 %v590_v53  ;;  %v301_v44 = vpop.f32.mrf.mxu0 }
 0x2e9   :  { %v405_v49 = vadd.f32 0.5, %v403_v48  ;;  %v302_v45 = vadd.f32 %v301_v44, %v1758_v16  ;;  %v1123_v44 = vld [vmem:[#allocation17] sm:$0xff] }
 0x2ed   :  { %601 = vrot.lane.b32.xlu0 %v1780_v59, %s1593_s18  ;;  %v1190_v54 = vpop.eup %1189 }
 0x2ee   :  { %v424_v46 = vpop.permute.xlu2 %423  ;;  %v593_v55 = vmul.f32 0.5, %v1190_v54  ;;  %v1192_v57 = vpop.eup %1191 }
 0x2ef   :  { %v428_v47 = vmul.f32 %v424_v46, %v406_v29  ;;  %v594_v61 = vmul.f32 0.5, %v1192_v57 }
 0x2f0   :  { %v595_v56 = vadd.f32 0.5, %v593_v55 }
 0x2f1   :  { %433 = vrot.lane.b32.xlu2 %v428_v47, %s1593_s18  ;;  %v596_v62 = vadd.f32 0.5, %v594_v61 }
 0x2f6   :  { %v412_v60 = vpop.permute.xlu2 %411 }
 0x2f7   :  { %v417_v6 = vmul.f32 %v412_v60, %v405_v49 }
 0x2fe   :  { %v422_v51 = vpop.permute.xlu1 %421 }
 0x2ff   :  { %v427_v52 = vmul.f32 %v422_v51, %v405_v49 }
 0x301   :  { %431 = vrot.lane.b32.xlu1 %v427_v52, %s1593_s18 }
 0x309   :  { %603 = vrot.lane.b32.xlu1 %v1783_v0, %s1593_s18 }
 0x34b   :  { %v434_v0 = vpop.permute.xlu2 %433 }
 0x34f   :  { %v612_v58 = vpop.permute.xlu0 %611 }
 0x350   :  { %v617_v59 = vmul.f32 %v612_v58, %v595_v56 }
 0x352   :  { %621 = vrot.lane.b32.xlu2 %v617_v59, %s1593_s18 }
 0x357   :  { %v414_v63 = vpop.permute.xlu0 %413  ;;  %v614_v1 = vpop.permute.xlu1 %613 }
 0x358   :  { %v418_v2 = vmul.f32 %v414_v63, %v406_v29  ;;  %v618_v3 = vmul.f32 %v614_v1, %v596_v62 }
 0x35a   :  { %v1809_v4 = vadd.f32 %v434_v0, %v418_v2  ;;  %623 = vrot.lane.b32.xlu0 %v618_v3, %s1593_s18 }
 0x35c   :  { %1193 = vtanh.f32 %v1809_v4 }
 0x35f   :  { %v602_v10 = vpop.permute.xlu0 %601 }
 0x360   :  { %v607_v11 = vmul.f32 %v602_v10, %v595_v56 }
 0x362   :  { %v1194_v5 = vpop.eup %1193 }
 0x363   :  { %445 = vrot.lane.b32.xlu2 %v1194_v5, %s1581_s17 }
 0x373   :  { %v432_v7 = vpop.permute.xlu1 %431 }
 0x374   :  { %v1814_v8 = vadd.f32 %v432_v7, %v417_v6 }
 0x376   :  { %1195 = vtanh.f32 %v1814_v8 }
 0x37b   :  { %v604_v19 = vpop.permute.xlu1 %603 }
 0x37c   :  { %v1196_v9 = vpop.eup %1195  ;;  %v608_v20 = vmul.f32 %v604_v19, %v596_v62 }
 0x37d   :  { %443 = vrot.lane.b32.xlu1 %v1196_v9, %s1581_s17 }
 0x3ac   :  { %v622_v15 = vpop.permute.xlu2 %621 }
 0x3ad   :  { %v1818_v17 = vadd.f32 %v622_v15, %v607_v11 }
 0x3af   :  { %1197 = vtanh.f32 %v1818_v17 }
 0x3b5   :  { %v1198_v18 = vpop.eup %1197 }
 0x3b6   :  { %633 = vrot.lane.b32.xlu0 %v1198_v18, %s1581_s17 }
 0x3bd   :  { %v446_v25 = vpop.permute.xlu2 %445 }
 0x3be   :  { %v450_v28 = vmul.f32 %v446_v25, %v406_v29 }
 0x3cc   :  { %v624_v22 = vpop.permute.xlu0 %623 }
 0x3cd   :  { %v1822_v23 = vadd.f32 %v624_v22, %v608_v20 }
 0x3cf   :  { %1199 = vtanh.f32 %v1822_v23 }
 0x3d5   :  { %v1200_v24 = vpop.eup %1199 }
 0x3d6   :  { %635 = vrot.lane.b32.xlu1 %v1200_v24, %s1581_s17 }
 0x3ef   :  { %v444_v27 = vpop.permute.xlu1 %443 }
 0x3f0   :  { %v449_v30 = vmul.f32 %v444_v27, %v405_v49 }
 0x3f2   :  { %v451_v32 = vpack.c.bf16 %v450_v28, %v449_v30 }
 0x3f4   :  { %453 = vrot.lane.b32.xlu2 %v451_v32, %s1593_s18 }
 0x428   :  { %v634_v33 = vpop.permute.xlu0 %633 }
 0x429   :  { %v639_v35 = vmul.f32 %v634_v33, %v595_v56 }
 0x448   :  { %v636_v34 = vpop.permute.xlu1 %635 }
 0x449   :  { %v640_v36 = vmul.f32 %v636_v34, %v596_v62 }
 0x44b   :  { %v641_v37 = vpack.c.bf16 %v640_v36, %v639_v35 }
 0x44d   :  { %643 = vrot.lane.b32.xlu0 %v641_v37, %s1593_s18 }
 0x44e   :  { %v454_v38 = vpop.permute.xlu2 %453 }
 0x44f   :  { %1042 = vmatmul.msk.bf16.vlgmr.msra.gmra.mxu3 %vm270_vm0, %v454_v38 }
 0x4bf   :  { %v644_v39 = vpop.permute.xlu0 %643 }
 0x4c0   :  { %1052 = vmatmul.msk.bf16.vlgmr.msrb.gmra.mxu3 %vm270_vm0, %v644_v39 }
 0x4d2   :  { %v467_v42 = vpop.f32.mrf.mxu3 }
 0x4d3   :  { %v472_v43 = vadd.f32 %v467_v42, %v300_v41  ;;  %v1124_v42 = vld [vmem:[#allocation17 + $0x8] sm:$0xff] }
 0x4d4   :  { %840 = vmatpush.bf16.msrb.mxu1 %v1124_v42 }
 0x4d5   :  { %1201 = vtanh.f32 %v472_v43  ;;  %v474_v48 = vmul.f32 0.5, %v472_v43  ;;  %v1119_v43 = vld [vmem:[#allocation13] sm:$0xff] }
 0x4d8   :  { %841 = vmatpush.bf16.msrb.mxu1 %v1123_v44 }
 0x4da   :  { %v469_v29 = vpop.f32.mrf.mxu3 }
 0x4db   :  { %v1202_v46 = vpop.eup %1201  ;;  %v473_v47 = vadd.f32 %v469_v29, %v302_v45  ;;  %v1122_v45 = vld [vmem:[#allocation14 + $0x8] sm:$0xff] }
 0x4dc   :  { %488 = vrot.lane.b32.xlu1 %v1202_v46, %s1581_s17  ;;  %v1128_v29 = vld [vmem:[#allocation11 + $0x8] sm:$0xff]  ;;  %v1125_v46 = vld [vmem:[#allocation19] sm:$0xff]  ;;  %742 = vmatpush.bf16.msra.mxu2 %v1122_v45 }
 0x4dd   :  { %1203 = vtanh.f32 %v473_v47  ;;  %v475_v49 = vmul.f32 0.5, %v473_v47  ;;  %v1121_v47 = vld [vmem:[#allocation14] sm:$0xff] }
 0x4de   :  { %1205 = vtanh.f32 %v474_v48 }
 0x4df   :  { %1207 = vtanh.f32 %v475_v49 }
 0x4e0   :  { %743 = vmatpush.bf16.msra.mxu2 %v1121_v47 }
 0x4e3   :  { %v1204_v31 = vpop.eup %1203 }
 0x4e4   :  { %490 = vrot.lane.b32.xlu2 %v1204_v31, %s1581_s17  ;;  %v1206_v50 = vpop.eup %1205  ;;  %880 = vmatpush.bf16.msrb.mxu2 %v1128_v29 }
 0x4e5   :  { %v478_v53 = vmul.f32 0.5, %v1206_v50  ;;  %v1208_v16 = vpop.eup %1207 }
 0x4e6   :  { %v479_v57 = vmul.f32 0.5, %v1208_v16  ;;  %v1130_v16 = vld [vmem:[#allocation16 + $0x8] sm:$0xff] }
 0x4e7   :  { %v480_v58 = vadd.f32 0.5, %v478_v53  ;;  %v1127_v53 = vld [vmem:[#allocation11] sm:$0xff] }
 0x4e8   :  { %v481_v62 = vadd.f32 0.5, %v479_v57  ;;  %881 = vmatpush.bf16.msrb.mxu2 %v1127_v53 }
 0x4e9   :  { %v484_v1 = vmul.f32 %v480_v58, %v1814_v8 }
 0x4ea   :  { %v485_v19 = vmul.f32 %v481_v62, %v1809_v4 }
 0x53e   :  { %v491_v61 = vpop.permute.xlu2 %490 }
 0x543   :  { %v657_v51 = vpop.f32.mrf.mxu3 }
 0x544   :  { %v662_v52 = vadd.f32 %v657_v51, %v1761_v21  ;;  %v495_v21 = vmul.f32 %v491_v61, %v481_v62 }
 0x546   :  { %1209 = vtanh.f32 %v662_v52  ;;  %v664_v3 = vmul.f32 0.5, %v662_v52 }
 0x54b   :  { %v659_v54 = vpop.f32.mrf.mxu3 }
 0x54c   :  { %v1210_v55 = vpop.eup %1209  ;;  %v663_v56 = vadd.f32 %v659_v54, %v1764_v26  ;;  %v1129_v54 = vld [vmem:[#allocation16] sm:$0xff] }
 0x54d   :  { %678 = vrot.lane.b32.xlu0 %v1210_v55, %s1581_s17 }
 0x54e   :  { %1211 = vtanh.f32 %v663_v56  ;;  %v489_v59 = vpop.permute.xlu1 %488  ;;  %v665_v5 = vmul.f32 0.5, %v663_v56 }
 0x54f   :  { %v494_v60 = vmul.f32 %v489_v59, %v480_v58 }
 0x551   :  { %498 = vrot.lane.b32.xlu2 %v494_v60, %s1593_s18 }
 0x554   :  { %v1212_v63 = vpop.eup %1211 }
 0x555   :  { %680 = vrot.lane.b32.xlu1 %v1212_v63, %s1581_s17  ;;  %500 = vrot.lane.b32.xlu0 %v495_v21, %s1593_s18 }
 0x5ab   :  { %v499_v26 = vpop.permute.xlu2 %498 }
 0x5ac   :  { %v504_v2 = vadd.f32 %v499_v26, %v484_v1 }
 0x5ae   :  { %1213 = vtanh.f32 %v504_v2 }
 0x5af   :  { %1215 = vtanh.f32 %v664_v3 }
 0x5b0   :  { %1217 = vtanh.f32 %v665_v5 }
 0x5b4   :  { %v1214_v0 = vpop.eup %1213 }
 0x5b5   :  { %510 = vrot.lane.b32.xlu0 %v1214_v0, %s1581_s17  ;;  %v1216_v6 = vpop.eup %1215 }
 0x5b6   :  { %v668_v7 = vmul.f32 0.5, %v1216_v6  ;;  %v1218_v10 = vpop.eup %1217 }
 0x5b7   :  { %v669_v18 = vmul.f32 0.5, %v1218_v10 }
 0x5b8   :  { %v670_v9 = vadd.f32 0.5, %v668_v7 }
 0x5b9   :  { %v671_v8 = vadd.f32 0.5, %v669_v18 }
 0x5ba   :  { %v674_v4 = vmul.f32 %v670_v9, %v1818_v17  ;;  %v1126_v17 = vld [vmem:[#allocation19 + $0x8] sm:$0xff] }
 0x5bb   :  { %v675_v28 = vmul.f32 %v671_v8, %v1822_v23  ;;  %v1120_v23 = vld [vmem:[#allocation13 + $0x8] sm:$0xff]  ;;  %814 = vmatpush.bf16.msrb.mxu0 %v1126_v17 }
 0x5bc   :  { %774 = vmatpush.bf16.msra.mxu3 %v1120_v23 }
 0x5bf   :  { %v679_v11 = vpop.permute.xlu0 %678  ;;  %815 = vmatpush.bf16.msrb.mxu0 %v1125_v46 }
 0x5c0   :  { %v684_v15 = vmul.f32 %v679_v11, %v670_v9  ;;  %775 = vmatpush.bf16.msra.mxu3 %v1119_v43 }
 0x5c2   :  { %688 = vrot.lane.b32.xlu1 %v684_v15, %s1593_s18 }
 0x5c3   :  { %928 = vmatpush.bf16.msra.mxu0 %v1130_v16 }
 0x5c4   :  { %898 = vmatpush.bf16.msrb.mxu3 %v1128_v29 }
 0x5c7   :  { %v681_v20 = vpop.permute.xlu1 %680  ;;  %v501_v22 = vpop.permute.xlu0 %500  ;;  %929 = vmatpush.bf16.msra.mxu0 %v1129_v54 }
 0x5c8   :  { %v685_v24 = vmul.f32 %v681_v20, %v671_v8  ;;  %v505_v25 = vadd.f32 %v501_v22, %v485_v19  ;;  %899 = vmatpush.bf16.msrb.mxu3 %v1127_v53 }
 0x5ca   :  { %1219 = vtanh.f32 %v505_v25  ;;  %690 = vrot.lane.b32.xlu2 %v685_v24, %s1593_s18 }
 0x5d0   :  { %v1220_v27 = vpop.eup %1219 }
 0x5d1   :  { %512 = vrot.lane.b32.xlu1 %v1220_v27, %s1581_s17 }
 0x624   :  { %v691_v30 = vpop.permute.xlu2 %690 }
 0x625   :  { %v695_v32 = vadd.f32 %v691_v30, %v675_v28 }
 0x627   :  { %1221 = vtanh.f32 %v695_v32  ;;  %v511_v37 = vpop.permute.xlu0 %510 }
 0x628   :  { %v516_v39 = vmul.f32 %v511_v37, %v480_v58 }
 0x62d   :  { %v1222_v33 = vpop.eup %1221 }
 0x62e   :  { %702 = vrot.lane.b32.xlu0 %v1222_v33, %s1581_s17 }
 0x634   :  { %v689_v34 = vpop.permute.xlu1 %688 }
 0x635   :  { %v694_v35 = vadd.f32 %v689_v34, %v674_v4 }
 0x637   :  { %1223 = vtanh.f32 %v694_v35 }
 0x63d   :  { %v1224_v36 = vpop.eup %1223 }
 0x63e   :  { %700 = vrot.lane.b32.xlu2 %v1224_v36, %s1581_s17 }
 0x643   :  { %v513_v38 = vpop.permute.xlu1 %512 }
 0x644   :  { %v517_v40 = vmul.f32 %v513_v38, %v481_v62 }
 0x646   :  { %v708_v41 = vpack.c.bf16 %v517_v40, %v516_v39 }
 0x648   :  { %751 = vrot.lane.b32.xlu2 %v708_v41, %s1593_s18 }
 0x698   :  { %v701_v31 = vpop.permute.xlu2 %700 }
 0x699   :  { %v706_v49 = vmul.f32 %v701_v31, %v670_v9 }
 0x6a0   :  { %v703_v48 = vpop.permute.xlu0 %702 }
 0x6a1   :  { %v707_v51 = vmul.f32 %v703_v48, %v671_v8 }
 0x6a2   :  { %v752_v52 = vpop.permute.xlu2 %751 }
 0x6a3   :  { %v709_v50 = vpack.c.bf16 %v707_v51, %v706_v49  ;;  %1070 = vmatmul.msk.bf16.vlgmr.msra.gmra.mxu3 %vm270_vm0, %v752_v52  ;;  %1088 = vmatmul.msk.bf16.vlgmr.msrb.gmra.mxu1 %vm270_vm0, %v752_v52 }
 0x6a5   :  { %719 = vrot.lane.b32.xlu1 %v709_v50, %s1593_s18 }
 0x6b3   :  { %1098 = vmatmul.msk.bf16.vlgmr.msrb.gmra.mxu3 %vm270_vm0, %v1752_v14  ;;  %v1151_v14 = vld [vmem:[%s1900_s8] ss:$0 sm:$0xff]  ;;  %s1594_s8 = smov [#allocation21]  }
 0x717   :  { %v720_v55 = vpop.permute.xlu1 %719 }
 0x718   :  { %1061 = vmatmul.msk.bf16.vlgmr.msra.gmra.mxu2 %vm270_vm0, %v720_v55  ;;  %1079 = vmatmul.msk.bf16.vlgmr.msrb.gmra.mxu0 %vm270_vm0, %v720_v55 }
 0x720   :  { %v843_v62 = vpop.f32.mrf.mxu1 }
 0x726   :  { %v777_v56 = vpop.f32.mrf.mxu3 }
 0x728   :  { %1097 = vmatmul.msk.bf16.vlgmr.msrb.gmra.mxu2 %vm270_vm0, %v1740_v12  ;;  %1107 = vmatmul.msk.bf16.vlgmr.msra.gmra.mxu0 %vm270_vm0, %v1746_v13  ;;  %v1152_v12 = vld [vmem:[%s1904_s12] ss:$0 sm:$0xff]  ;;  %v845_v10 = vpop.f32.mrf.mxu1  ;;  %s957_s12 = sshll.u32 %s1594_s8, 4  ;;  %s958_s12 = int_to_ptr.vmem [resolvable:$true] %s957_s12 }
 0x72e   :  { %v779_v57 = vpop.f32.mrf.mxu3 }
 0x736   :  { %v901_v60 = vpop.f32.mrf.mxu3 }
 0x73e   :  { %v903_v6 = vpop.f32.mrf.mxu3 }
 0x795   :  { %v817_v58 = vpop.f32.mrf.mxu0 }
 0x796   :  { %v844_v1 = vadd.f32 %v843_v62, %v817_v58 }
 0x798   :  { %v852_v0 = vadd.f32 %v1152_v12, %v844_v1 }
 0x79b   :  { %v745_v59 = vpop.f32.mrf.mxu2 }
 0x79c   :  { %v778_v61 = vadd.f32 %v777_v56, %v745_v59 }
 0x79d   :  { %v819_v21 = vpop.f32.mrf.mxu0 }
 0x79e   :  { %v786_v63 = vadd.f32 %v1151_v14, %v778_v61  ;;  %v846_v11 = vadd.f32 %v845_v10, %v819_v21 }
 0x7a0   :  { %v902_v26 = vadd.f32 %v901_v60, %v786_v63  ;;  %v853_v22 = vadd.f32 %v1152_v12, %v846_v11 }
 0x7a2   :  { %v906_v13 = vmax.f32 %v902_v26, 0.0 }
 0x7a3   :  { %v747_v2 = vpop.f32.mrf.mxu2 }
 0x7a4   :  { %908 = vst.msk [vmem:[#allocation23] sm:$0xff] %vm270_vm0, %v906_v13  ;;  %v780_v3 = vadd.f32 %v779_v57, %v747_v2 }
 0x7a5   :  { %v931_v5 = vpop.f32.mrf.mxu0 }
 0x7a6   :  { %v932_v7 = vadd.f32 %v931_v5, %v852_v0  ;;  %v787_v9 = vadd.f32 %v1151_v14, %v780_v3 }
 0x7a8   :  { %v936_v15 = vmax.f32 %v932_v7, 0.0  ;;  %v904_v18 = vadd.f32 %v903_v6, %v787_v9 }
 0x7aa   :  { %938 = vst.msk [vmem:[#allocation21] sm:$0xff] %vm270_vm0, %v936_v15  ;;  %v907_v8 = vmax.f32 %v904_v18, 0.0 }
 0x7ab   :  { %v883_v19 = vpop.f32.mrf.mxu2 }
 0x7ac   :  { %909 = vst.msk [vmem:[#allocation23 + $0x8] sm:$0xff] %vm270_vm0, %v907_v8  ;;  %v884_v20 = vadd.f32 %v883_v19, %v786_v63 }
 0x7ad   :  { %v933_v24 = vpop.f32.mrf.mxu0 }
 0x7ae   :  { %v888_v25 = vmax.f32 %v884_v20, 0.0  ;;  %v934_v27 = vadd.f32 %v933_v24, %v853_v22 }
 0x7b0   :  { %890 = vst.msk [vmem:[#allocation20] sm:$0xff] %vm270_vm0, %v888_v25  ;;  %v937_v28 = vmax.f32 %v934_v27, 0.0 }
 0x7b2   :  { %939 = vst.msk [vmem:[#allocation21 + $0x8] sm:$0xff] %vm270_vm0, %v937_v28 }
 0x7b3   :  { %v885_v30 = vpop.f32.mrf.mxu2  ;;  %965 = dma.vmem_to_hbm [thread:$0]  %s958_s12, 256, %s960_s30, [#allocation22], %s1578_s23, %s1578_s23, %s1579_s24  }
 0x7b4   :  { %v886_v32 = vadd.f32 %v885_v30, %v787_v9  ;;  %978 = dma.vmem_to_hbm [thread:$0]  %s971_s27, 256, %s973_s1, [#allocation22], %s1578_s23, %s1578_s23, %s1579_s24  }
 0x7b6   :  { %v889_v33 = vmax.f32 %v886_v32, 0.0 }
 0x7b8   :  { %891 = vst.msk [vmem:[#allocation20 + $0x8] sm:$0xff] %vm270_vm0, %v889_v33 }
 0x7b9   :  { %952 = dma.vmem_to_hbm [thread:$0]  %s945_s19, 256, %s947_s10, [#allocation4], %s1578_s23, %s1578_s23, %s1579_s24  }
 0x7ba   :  { %1573 = dma.done.wait [#allocation4], 256  }
 0x7bb   :  { %1574 = vsyncadd [#allocation4], 4294967040 }
 0x7bc   :  { %1575 = dma.done.wait [#allocation22], 512  }
 0x7bd   :  { %1576 = vsyncadd [#allocation22], 4294966784 }
 0x7be   :  { %991 = vsyncpa [#allocation3], 1 }
 0x7bf   :  { %992 = vsyncpa [#allocation6], 1 }
 0x7c0   :  { %993 = vsyncpa [#allocation9], 1 }
 0x7c1   :  { %994 = vsyncpa [#allocation12], 1 }
 0x7c2   :  { %995 = vsyncpa [#allocation15], 1 }
 0x7c3   :  { %996 = vsyncpa [#allocation18], 1 }
 0x7c4   :  { %997 = vsyncpa [#allocation4], 1 }
 0x7c5   :  { %998 = vsyncpa [#allocation22], 1 }

</bundles_post_ra>
